<compile_context>
chip_gen: v5e
topology: v5e:2x2
jax: 0.10.0
libtpu: 0.0.40
codegen_flags: <defaults>
</compile_context>

<pallas_src>
import functools

import jax
import jax.numpy as jnp
from jax.experimental import pallas as pl
from jax.experimental.pallas import tpu as pltpu


# ----------------------------- Pallas kernel ------------------------------ #

def _make_conv_kernel(stride, Ho, Wo, Cin, Hq, Wq, TCO):
    """3x3 conv (as 9 shifted matmuls) + folded-BN bias + ReLU, one image."""
    s = stride
    M = Ho * Wo

    def kernel(x_ref, w_ref, b_ref, o_ref):
        # x_ref: (1, s*s*Hq, Wq, Cin)  bf16 phase-split padded input (1 image)
        # w_ref: (9, Cin, TCO)         bf16 conv weights with BN scale folded in
        # b_ref: (1, TCO)              f32 folded BN bias
        # o_ref: (1, M, TCO)           output block (lane-dense channels)
        acc = jnp.zeros((M, TCO), jnp.float32)
        for t in range(9):                      # unrolled 3x3 tap loop
            dy, dx = t // 3, t % 3
            pidx = (dy % s) * s + (dx % s)      # phase plane of this tap
            r0 = pidx * Hq + (dy // s)          # row start inside phase plane
            c0 = dx // s                        # col start inside phase plane
            slab = x_ref[0, r0:r0 + Ho, c0:c0 + Wo, :]          # (Ho, Wo, Cin)
            acc += jnp.dot(slab.reshape(M, Cin), w_ref[t],
                           preferred_element_type=jnp.float32)  # MXU, f32 acc
        y = jnp.maximum(acc + b_ref[...], 0.0)                  # f32 epilogue
        o_ref[0, :, :] = y.astype(o_ref.dtype)

    return kernel


# ------------------------------- glue (JAX) -------------------------------- #

def _phase_split_pad(x_nhwc, stride, Ho, Wo):
    """Zero-pad (conv pad=1) and space-to-depth split so every 3x3 tap becomes
    a contiguous (Ho, Wo, Cin) slice inside the kernel.  ~1x input traffic."""
    N, H, W, C = x_nhwc.shape
    s = stride
    Hq, Wq = Ho + 2, Wo + 2
    Hp, Wp = s * Hq, s * Wq                       # padded spatial dims
    xp = jnp.pad(x_nhwc, ((0, 0), (1, Hp - H - 1), (1, Wp - W - 1), (0, 0)))
    # row r = hq*s + ph, col c = wq*s + pw  ->  [n, ph*s+pw, hq, wq, c]
    xph = xp.reshape(N, Hq, s, Wq, s, C).transpose(0, 2, 4, 1, 3, 5)
    return xph.reshape(N, s * s * Hq, Wq, C), Hq, Wq


def conv3x3_bn_relu(x_nhwc, w_oihw, gamma, beta, rmean, rvar, eps, stride,
                    out_dtype):
    """Fused 3x3 conv (pad=1, no bias) + inference BatchNorm + ReLU (NHWC)."""
    N, H, W, Cin = x_nhwc.shape
    Cout = w_oihw.shape[0]
    s = stride
    Ho = (H + 2 - 3) // s + 1
    Wo = (W + 2 - 3) // s + 1
    M = Ho * Wo

    TCO = 128                                       # lane-dense channel tile
    Cout_p = ((Cout + TCO - 1) // TCO) * TCO

    # Fold BN (inference) into per-channel scale (into weights) + bias.
    scale = gamma / jnp.sqrt(rvar + eps)
    bias = beta - rmean * scale
    # (Cout, Cin, 3, 3) -> (kh, kw, Cin, Cout) -> (9, Cin, Cout), scale folded.
    wmat = jnp.transpose(w_oihw, (2, 3, 1, 0)).reshape(9, Cin, Cout)
    wmat = (wmat * scale[None, None, :]).astype(jnp.bfloat16)
    wmat = jnp.pad(wmat, ((0, 0), (0, 0), (0, Cout_p - Cout)))
    bias_p = jnp.pad(bias, (0, Cout_p - Cout)).reshape(1, Cout_p)
    bias_p = bias_p.astype(jnp.float32)

    xph, Hq, Wq = _phase_split_pad(x_nhwc, s, Ho, Wo)
    xph = xph.astype(jnp.bfloat16)                  # bf16 MXU operand

    kernel = _make_conv_kernel(s, Ho, Wo, Cin, Hq, Wq, TCO)

    flops = 2 * N * M * 9 * Cin * Cout_p
    bytes_accessed = int(xph.size) * 2 + int(wmat.size) * 2 * N \
        + int(bias_p.size) * 4 + N * M * Cout_p * jnp.dtype(out_dtype).itemsize

    out = pl.pallas_call(
        kernel,
        out_shape=jax.ShapeDtypeStruct((N, M, Cout_p), out_dtype),
        grid=(N, Cout_p // TCO),
        in_specs=[
            pl.BlockSpec((1, s * s * Hq, Wq, Cin), lambda n, j: (n, 0, 0, 0)),
            pl.BlockSpec((9, Cin, TCO), lambda n, j: (0, 0, j)),
            pl.BlockSpec((1, TCO), lambda n, j: (0, j)),
        ],
        out_specs=pl.BlockSpec((1, M, TCO), lambda n, j: (n, 0, j)),
        compiler_params=pltpu.CompilerParams(
            dimension_semantics=("parallel", "parallel"),
            vmem_limit_bytes=32 * 1024 * 1024),
        cost_estimate=pl.CostEstimate(flops=flops, transcendentals=0,
                                      bytes_accessed=bytes_accessed),
    )(xph, wmat, bias_p)

    # Drop padded channels, restore NHWC.
    return out[:, :, :Cout].reshape(N, Ho, Wo, Cout)


def init_vanilla_block_params(key, w_in, w_out):
    ks = jax.random.split(key, 10)
    return {
        "a_w": 0.1 * jax.random.normal(ks[0], (w_out, w_in, 3, 3), jnp.float32),
        "a_gamma": 1.0 + 0.1 * jax.random.normal(ks[1], (w_out,), jnp.float32),
        "a_beta": 0.1 * jax.random.normal(ks[2], (w_out,), jnp.float32),
        "a_mean": 0.05 * jax.random.normal(ks[3], (w_out,), jnp.float32),
        "a_var": 0.5 + jax.random.uniform(ks[4], (w_out,), jnp.float32),
        "b_w": 0.1 * jax.random.normal(ks[5], (w_out, w_out, 3, 3), jnp.float32),
        "b_gamma": 1.0 + 0.1 * jax.random.normal(ks[6], (w_out,), jnp.float32),
        "b_beta": 0.1 * jax.random.normal(ks[7], (w_out,), jnp.float32),
        "b_mean": 0.05 * jax.random.normal(ks[8], (w_out,), jnp.float32),
        "b_var": 0.5 + jax.random.uniform(ks[9], (w_out,), jnp.float32),
    }


@functools.partial(jax.jit, static_argnames=("stride", "eps"))
def vanilla_block_forward(x_nchw, params, stride, eps=1e-5):
    # NCHW (PyTorch) -> NHWC
    x = jnp.transpose(x_nchw, (0, 2, 3, 1))
    # a: conv(stride) -> BN -> ReLU   (intermediate kept in bf16)
    x = conv3x3_bn_relu(x, params["a_w"], params["a_gamma"], params["a_beta"],
                        params["a_mean"], params["a_var"], eps, stride,
                        out_dtype=jnp.bfloat16)
    # b: conv(stride=1) -> BN -> ReLU (final output in f32)
    x = conv3x3_bn_relu(x, params["b_w"], params["b_gamma"], params["b_beta"],
                        params["b_mean"], params["b_var"], eps, 1,
                        out_dtype=jnp.float32)
    # NHWC -> NCHW
    return jnp.transpose(x, (0, 3, 1, 2))


# ----------------------------- references ---------------------------------- #

def _ref_conv_bn_relu_f32(x_nhwc, w_oihw, gamma, beta, rmean, rvar, eps, stride):
    w_hwio = jnp.transpose(w_oihw, (2, 3, 1, 0))
    y = jax.lax.conv_general_dilated(
        x_nhwc, w_hwio, (stride, stride), ((1, 1), (1, 1)),
        dimension_numbers=("NHWC", "HWIO", "NHWC"))
    scale = gamma / jnp.sqrt(rvar + eps)
    return jnp.maximum(y * scale + (beta - rmean * scale), 0.0)


def vanilla_block_ref_f32(x_nchw, params, stride, eps=1e-5):
    x = jnp.transpose(x_nchw, (0, 2, 3, 1))
    x = _ref_conv_bn_relu_f32(x, params["a_w"], params["a_gamma"], params["a_beta"],
                              params["a_mean"], params["a_var"], eps, stride)
    x = _ref_conv_bn_relu_f32(x, params["b_w"], params["b_gamma"], params["b_beta"],
                              params["b_mean"], params["b_var"], eps, 1)
    return jnp.transpose(x, (0, 3, 1, 2))


def _ref_conv_bn_relu_bf16(x_nhwc, w_oihw, gamma, beta, rmean, rvar, eps, stride):
    # Same numerics as the kernel: bf16 MXU operands (scale folded into w),
    # f32 accumulation, f32 bias/ReLU epilogue.
    scale = gamma / jnp.sqrt(rvar + eps)
    bias = beta - rmean * scale
    w_hwio = jnp.transpose(w_oihw, (2, 3, 1, 0)) * scale[None, None, None, :]
    y = jax.lax.conv_general_dilated(
        x_nhwc.astype(jnp.bfloat16), w_hwio.astype(jnp.bfloat16),
        (stride, stride), ((1, 1), (1, 1)),
        dimension_numbers=("NHWC", "HWIO", "NHWC"),
        preferred_element_type=jnp.float32)
    return jnp.maximum(y + bias, 0.0)


def vanilla_block_ref_bf16(x_nchw, params, stride, eps=1e-5):
    x = jnp.transpose(x_nchw, (0, 2, 3, 1))
    x = _ref_conv_bn_relu_bf16(x, params["a_w"], params["a_gamma"], params["a_beta"],
                               params["a_mean"], params["a_var"], eps, stride)
    x = x.astype(jnp.bfloat16)          # matches the bf16 intermediate
    x = _ref_conv_bn_relu_bf16(x, params["b_w"], params["b_gamma"], params["b_beta"],
                               params["b_mean"], params["b_var"], eps, 1)
    return jnp.transpose(x, (0, 3, 1, 2))


# ---------------------------------- main ----------------------------------- #

if __name__ == "__main__":
    key = jax.random.PRNGKey(0)
    kx, kp = jax.random.split(key)

    N, w_in, H, W = 2, 4, 16, 16
    w_out, stride = 8, 2

    x = jax.random.normal(kx, (N, w_in, H, W), jnp.float32)   # NCHW (PyTorch)
    params = init_vanilla_block_params(kp, w_in, w_out)

    out = jax.block_until_ready(vanilla_block_forward(x, params, stride))
    assert out.shape == (N, w_out, H // stride, W // stride), out.shape

    # Strict check vs a reference with identical bf16/f32 numerics.
    ref_m = jax.block_until_ready(vanilla_block_ref_bf16(x, params, stride))
    err_m = float(jnp.max(jnp.abs(out - ref_m)))
    assert jnp.allclose(out, ref_m, rtol=1e-3, atol=1e-3), err_m

    # Sanity check vs the pure-f32 PyTorch-semantics reference (bf16 rounding).
    ref_f = jax.block_until_ready(vanilla_block_ref_f32(x, params, stride))
    err_f = float(jnp.max(jnp.abs(out - ref_f)))
    assert jnp.allclose(out, ref_f, rtol=5e-2, atol=5e-2), err_f

    print("KERNEL_OK")
</pallas_src>

<mosaic_0001>
module attributes {stable_mosaic.version = 11 : i64} {
  func.func @kernel(%arg0: i32, %arg1: i32, %arg2: memref<1x40x10x4xbf16, #tpu.memory_space<vmem>>, %arg3: memref<9x4x128xbf16, #tpu.memory_space<vmem>>, %arg4: memref<1x128xf32, #tpu.memory_space<vmem>>, %arg5: memref<1x64x128xbf16, #tpu.memory_space<vmem>>) attributes {dimension_semantics = [#tpu.dimension_semantics<parallel>, #tpu.dimension_semantics<parallel>], iteration_bounds = array<i64: 2, 1>, scalar_prefetch = 0 : i64, scratch_operands = 0 : i64, tpu.core_type = #tpu.core_type<tc>, window_params = [{transform_indices = @transform_0, window_bounds = array<i64: 1, 40, 10, 4>}, {transform_indices = @transform_1, window_bounds = array<i64: 9, 4, 128>}, {transform_indices = @transform_2, window_bounds = array<i64: 1, 128>}, {transform_indices = @transform_3, window_bounds = array<i64: 1, 64, 128>}]} {
    %cst = arith.constant 0.000000e+00 : f32
    %0 = vector.broadcast %cst : f32 to vector<64x128xf32>
    %c0 = arith.constant 0 : index
    %c0_0 = arith.constant 0 : index
    %c0_1 = arith.constant 0 : index
    %c0_2 = arith.constant 0 : index
    %1 = vector.load %arg2[%c0, %c0_0, %c0_1, %c0_2] : memref<1x40x10x4xbf16, #tpu.memory_space<vmem>>, vector<1x8x8x4xbf16>
    %2 = vector.shape_cast %1 : vector<1x8x8x4xbf16> to vector<8x8x4xbf16>
    %3 = vector.shape_cast %2 : vector<8x8x4xbf16> to vector<64x4xbf16>
    %c0_3 = arith.constant 0 : index
    %c0_4 = arith.constant 0 : index
    %c0_5 = arith.constant 0 : index
    %4 = vector.load %arg3[%c0_3, %c0_4, %c0_5] : memref<9x4x128xbf16, #tpu.memory_space<vmem>>, vector<1x4x128xbf16>
    %5 = vector.shape_cast %4 : vector<1x4x128xbf16> to vector<4x128xbf16>
    %cst_6 = arith.constant dense<0.000000e+00> : vector<64x128xf32>
    %6 = tpu.matmul %3, %5, %cst_6 {dimension_numbers = #tpu.dot_dimension_numbers<[1], [0], [0], [1], [0, 0, 1, 1], [], []>} : vector<64x4xbf16>, vector<4x128xbf16>, vector<64x128xf32> -> vector<64x128xf32>
    %7 = arith.addf %0, %6 : vector<64x128xf32>
    %c0_7 = arith.constant 0 : index
    %c10 = arith.constant 10 : index
    %c0_8 = arith.constant 0 : index
    %c0_9 = arith.constant 0 : index
    %8 = vector.load %arg2[%c0_7, %c10, %c0_8, %c0_9] : memref<1x40x10x4xbf16, #tpu.memory_space<vmem>>, vector<1x8x8x4xbf16>
    %9 = vector.shape_cast %8 : vector<1x8x8x4xbf16> to vector<8x8x4xbf16>
    %10 = vector.shape_cast %9 : vector<8x8x4xbf16> to vector<64x4xbf16>
    %c1 = arith.constant 1 : index
    %c0_10 = arith.constant 0 : index
    %c0_11 = arith.constant 0 : index
    %11 = vector.load %arg3[%c1, %c0_10, %c0_11] : memref<9x4x128xbf16, #tpu.memory_space<vmem>>, vector<1x4x128xbf16>
    %12 = vector.shape_cast %11 : vector<1x4x128xbf16> to vector<4x128xbf16>
    %cst_12 = arith.constant dense<0.000000e+00> : vector<64x128xf32>
    %13 = tpu.matmul %10, %12, %cst_12 {dimension_numbers = #tpu.dot_dimension_numbers<[1], [0], [0], [1], [0, 0, 1, 1], [], []>} : vector<64x4xbf16>, vector<4x128xbf16>, vector<64x128xf32> -> vector<64x128xf32>
    %14 = arith.addf %7, %13 : vector<64x128xf32>
    %c0_13 = arith.constant 0 : index
    %c0_14 = arith.constant 0 : index
    %c1_15 = arith.constant 1 : index
    %c0_16 = arith.constant 0 : index
    %15 = vector.load %arg2[%c0_13, %c0_14, %c1_15, %c0_16] : memref<1x40x10x4xbf16, #tpu.memory_space<vmem>>, vector<1x8x8x4xbf16>
    %16 = vector.shape_cast %15 : vector<1x8x8x4xbf16> to vector<8x8x4xbf16>
    %17 = vector.shape_cast %16 : vector<8x8x4xbf16> to vector<64x4xbf16>
    %c2 = arith.constant 2 : index
    %c0_17 = arith.constant 0 : index
    %c0_18 = arith.constant 0 : index
    %18 = vector.load %arg3[%c2, %c0_17, %c0_18] : memref<9x4x128xbf16, #tpu.memory_space<vmem>>, vector<1x4x128xbf16>
    %19 = vector.shape_cast %18 : vector<1x4x128xbf16> to vector<4x128xbf16>
    %cst_19 = arith.constant dense<0.000000e+00> : vector<64x128xf32>
    %20 = tpu.matmul %17, %19, %cst_19 {dimension_numbers = #tpu.dot_dimension_numbers<[1], [0], [0], [1], [0, 0, 1, 1], [], []>} : vector<64x4xbf16>, vector<4x128xbf16>, vector<64x128xf32> -> vector<64x128xf32>
    %21 = arith.addf %14, %20 : vector<64x128xf32>
    %c0_20 = arith.constant 0 : index
    %c20 = arith.constant 20 : index
    %c0_21 = arith.constant 0 : index
    %c0_22 = arith.constant 0 : index
    %22 = vector.load %arg2[%c0_20, %c20, %c0_21, %c0_22] : memref<1x40x10x4xbf16, #tpu.memory_space<vmem>>, vector<1x8x8x4xbf16>
    %23 = vector.shape_cast %22 : vector<1x8x8x4xbf16> to vector<8x8x4xbf16>
    %24 = vector.shape_cast %23 : vector<8x8x4xbf16> to vector<64x4xbf16>
    %c3 = arith.constant 3 : index
    %c0_23 = arith.constant 0 : index
    %c0_24 = arith.constant 0 : index
    %25 = vector.load %arg3[%c3, %c0_23, %c0_24] : memref<9x4x128xbf16, #tpu.memory_space<vmem>>, vector<1x4x128xbf16>
    %26 = vector.shape_cast %25 : vector<1x4x128xbf16> to vector<4x128xbf16>
    %cst_25 = arith.constant dense<0.000000e+00> : vector<64x128xf32>
    %27 = tpu.matmul %24, %26, %cst_25 {dimension_numbers = #tpu.dot_dimension_numbers<[1], [0], [0], [1], [0, 0, 1, 1], [], []>} : vector<64x4xbf16>, vector<4x128xbf16>, vector<64x128xf32> -> vector<64x128xf32>
    %28 = arith.addf %21, %27 : vector<64x128xf32>
    %c0_26 = arith.constant 0 : index
    %c30 = arith.constant 30 : index
    %c0_27 = arith.constant 0 : index
    %c0_28 = arith.constant 0 : index
    %29 = vector.load %arg2[%c0_26, %c30, %c0_27, %c0_28] : memref<1x40x10x4xbf16, #tpu.memory_space<vmem>>, vector<1x8x8x4xbf16>
    %30 = vector.shape_cast %29 : vector<1x8x8x4xbf16> to vector<8x8x4xbf16>
    %31 = vector.shape_cast %30 : vector<8x8x4xbf16> to vector<64x4xbf16>
    %c4 = arith.constant 4 : index
    %c0_29 = arith.constant 0 : index
    %c0_30 = arith.constant 0 : index
    %32 = vector.load %arg3[%c4, %c0_29, %c0_30] : memref<9x4x128xbf16, #tpu.memory_space<vmem>>, vector<1x4x128xbf16>
    %33 = vector.shape_cast %32 : vector<1x4x128xbf16> to vector<4x128xbf16>
    %cst_31 = arith.constant dense<0.000000e+00> : vector<64x128xf32>
    %34 = tpu.matmul %31, %33, %cst_31 {dimension_numbers = #tpu.dot_dimension_numbers<[1], [0], [0], [1], [0, 0, 1, 1], [], []>} : vector<64x4xbf16>, vector<4x128xbf16>, vector<64x128xf32> -> vector<64x128xf32>
    %35 = arith.addf %28, %34 : vector<64x128xf32>
    %c0_32 = arith.constant 0 : index
    %c20_33 = arith.constant 20 : index
    %c1_34 = arith.constant 1 : index
    %c0_35 = arith.constant 0 : index
    %36 = vector.load %arg2[%c0_32, %c20_33, %c1_34, %c0_35] : memref<1x40x10x4xbf16, #tpu.memory_space<vmem>>, vector<1x8x8x4xbf16>
    %37 = vector.shape_cast %36 : vector<1x8x8x4xbf16> to vector<8x8x4xbf16>
    %38 = vector.shape_cast %37 : vector<8x8x4xbf16> to vector<64x4xbf16>
    %c5 = arith.constant 5 : index
    %c0_36 = arith.constant 0 : index
    %c0_37 = arith.constant 0 : index
    %39 = vector.load %arg3[%c5, %c0_36, %c0_37] : memref<9x4x128xbf16, #tpu.memory_space<vmem>>, vector<1x4x128xbf16>
    %40 = vector.shape_cast %39 : vector<1x4x128xbf16> to vector<4x128xbf16>
    %cst_38 = arith.constant dense<0.000000e+00> : vector<64x128xf32>
    %41 = tpu.matmul %38, %40, %cst_38 {dimension_numbers = #tpu.dot_dimension_numbers<[1], [0], [0], [1], [0, 0, 1, 1], [], []>} : vector<64x4xbf16>, vector<4x128xbf16>, vector<64x128xf32> -> vector<64x128xf32>
    %42 = arith.addf %35, %41 : vector<64x128xf32>
    %c0_39 = arith.constant 0 : index
    %c1_40 = arith.constant 1 : index
    %c0_41 = arith.constant 0 : index
    %c0_42 = arith.constant 0 : index
    %43 = vector.load %arg2[%c0_39, %c1_40, %c0_41, %c0_42] : memref<1x40x10x4xbf16, #tpu.memory_space<vmem>>, vector<1x8x8x4xbf16>
    %44 = vector.shape_cast %43 : vector<1x8x8x4xbf16> to vector<8x8x4xbf16>
    %45 = vector.shape_cast %44 : vector<8x8x4xbf16> to vector<64x4xbf16>
    %c6 = arith.constant 6 : index
    %c0_43 = arith.constant 0 : index
    %c0_44 = arith.constant 0 : index
    %46 = vector.load %arg3[%c6, %c0_43, %c0_44] : memref<9x4x128xbf16, #tpu.memory_space<vmem>>, vector<1x4x128xbf16>
    %47 = vector.shape_cast %46 : vector<1x4x128xbf16> to vector<4x128xbf16>
    %cst_45 = arith.constant dense<0.000000e+00> : vector<64x128xf32>
    %48 = tpu.matmul %45, %47, %cst_45 {dimension_numbers = #tpu.dot_dimension_numbers<[1], [0], [0], [1], [0, 0, 1, 1], [], []>} : vector<64x4xbf16>, vector<4x128xbf16>, vector<64x128xf32> -> vector<64x128xf32>
    %49 = arith.addf %42, %48 : vector<64x128xf32>
    %c0_46 = arith.constant 0 : index
    %c11 = arith.constant 11 : index
    %c0_47 = arith.constant 0 : index
    %c0_48 = arith.constant 0 : index
    %50 = vector.load %arg2[%c0_46, %c11, %c0_47, %c0_48] : memref<1x40x10x4xbf16, #tpu.memory_space<vmem>>, vector<1x8x8x4xbf16>
    %51 = vector.shape_cast %50 : vector<1x8x8x4xbf16> to vector<8x8x4xbf16>
    %52 = vector.shape_cast %51 : vector<8x8x4xbf16> to vector<64x4xbf16>
    %c7 = arith.constant 7 : index
    %c0_49 = arith.constant 0 : index
    %c0_50 = arith.constant 0 : index
    %53 = vector.load %arg3[%c7, %c0_49, %c0_50] : memref<9x4x128xbf16, #tpu.memory_space<vmem>>, vector<1x4x128xbf16>
    %54 = vector.shape_cast %53 : vector<1x4x128xbf16> to vector<4x128xbf16>
    %cst_51 = arith.constant dense<0.000000e+00> : vector<64x128xf32>
    %55 = tpu.matmul %52, %54, %cst_51 {dimension_numbers = #tpu.dot_dimension_numbers<[1], [0], [0], [1], [0, 0, 1, 1], [], []>} : vector<64x4xbf16>, vector<4x128xbf16>, vector<64x128xf32> -> vector<64x128xf32>
    %56 = arith.addf %49, %55 : vector<64x128xf32>
    %c0_52 = arith.constant 0 : index
    %c1_53 = arith.constant 1 : index
    %c1_54 = arith.constant 1 : index
    %c0_55 = arith.constant 0 : index
    %57 = vector.load %arg2[%c0_52, %c1_53, %c1_54, %c0_55] : memref<1x40x10x4xbf16, #tpu.memory_space<vmem>>, vector<1x8x8x4xbf16>
    %58 = vector.shape_cast %57 : vector<1x8x8x4xbf16> to vector<8x8x4xbf16>
    %59 = vector.shape_cast %58 : vector<8x8x4xbf16> to vector<64x4xbf16>
    %c8 = arith.constant 8 : index
    %c0_56 = arith.constant 0 : index
    %c0_57 = arith.constant 0 : index
    %60 = vector.load %arg3[%c8, %c0_56, %c0_57] : memref<9x4x128xbf16, #tpu.memory_space<vmem>>, vector<1x4x128xbf16>
    %61 = vector.shape_cast %60 : vector<1x4x128xbf16> to vector<4x128xbf16>
    %cst_58 = arith.constant dense<0.000000e+00> : vector<64x128xf32>
    %62 = tpu.matmul %59, %61, %cst_58 {dimension_numbers = #tpu.dot_dimension_numbers<[1], [0], [0], [1], [0, 0, 1, 1], [], []>} : vector<64x4xbf16>, vector<4x128xbf16>, vector<64x128xf32> -> vector<64x128xf32>
    %63 = arith.addf %56, %62 : vector<64x128xf32>
    %c0_59 = arith.constant 0 : index
    %c0_60 = arith.constant 0 : index
    %64 = vector.load %arg4[%c0_59, %c0_60] : memref<1x128xf32, #tpu.memory_space<vmem>>, vector<1x128xf32>
    %65 = vector.broadcast %64 : vector<1x128xf32> to vector<64x128xf32>
    %66 = arith.addf %63, %65 : vector<64x128xf32>
    %cst_61 = arith.constant 0.000000e+00 : f32
    %67 = vector.broadcast %cst_61 : f32 to vector<64x128xf32>
    %68 = arith.maximumf %66, %67 : vector<64x128xf32>
    %69 = arith.truncf %68 : vector<64x128xf32> to vector<64x128xbf16>
    %c0_62 = arith.constant 0 : index
    %c0_63 = arith.constant 0 : index
    %c0_64 = arith.constant 0 : index
    %70 = vector.load %arg5[%c0_62, %c0_63, %c0_64] : memref<1x64x128xbf16, #tpu.memory_space<vmem>>, vector<1x64x128xbf16>
    %71 = vector.shape_cast %70 : vector<1x64x128xbf16> to vector<64x128xbf16>
    %72 = vector.shape_cast %69 : vector<64x128xbf16> to vector<1x64x128xbf16>
    tpu.vector_store %arg5[%c0_62, %c0_63, %c0_64], %72 {strides = array<i32>} : memref<1x64x128xbf16, #tpu.memory_space<vmem>>, vector<1x64x128xbf16>,
    return
  }
  func.func @transform_0(%arg0: i32, %arg1: i32) -> (i32, i32, i32, i32) {
    %c0_i32 = arith.constant 0 : i32
    %c0_i32_0 = arith.constant 0 : i32
    %c0_i32_1 = arith.constant 0 : i32
    %c0_i32_2 = arith.constant 0 : i32
    return %arg0, %c0_i32, %c0_i32_0, %c0_i32_1 : i32, i32, i32, i32
  }
  func.func @transform_1(%arg0: i32, %arg1: i32) -> (i32, i32, i32) {
    %c0_i32 = arith.constant 0 : i32
    %c0_i32_0 = arith.constant 0 : i32
    %c0_i32_1 = arith.constant 0 : i32
    return %c0_i32, %c0_i32_0, %arg1 : i32, i32, i32
  }
  func.func @transform_2(%arg0: i32, %arg1: i32) -> (i32, i32) {
    %c0_i32 = arith.constant 0 : i32
    %c0_i32_0 = arith.constant 0 : i32
    return %c0_i32, %arg1 : i32, i32
  }
  func.func @transform_3(%arg0: i32, %arg1: i32) -> (i32, i32, i32) {
    %c0_i32 = arith.constant 0 : i32
    %c0_i32_0 = arith.constant 0 : i32
    return %arg0, %c0_i32, %arg1 : i32, i32, i32
  }
}

module attributes {stable_mosaic.version = 11 : i64} {
  func.func @kernel(%arg0: i32, %arg1: i32, %arg2: memref<1x10x10x8xbf16, #tpu.memory_space<vmem>>, %arg3: memref<9x8x128xbf16, #tpu.memory_space<vmem>>, %arg4: memref<1x128xf32, #tpu.memory_space<vmem>>, %arg5: memref<1x64x128xf32, #tpu.memory_space<vmem>>) attributes {dimension_semantics = [#tpu.dimension_semantics<parallel>, #tpu.dimension_semantics<parallel>], iteration_bounds = array<i64: 2, 1>, scalar_prefetch = 0 : i64, scratch_operands = 0 : i64, tpu.core_type = #tpu.core_type<tc>, window_params = [{transform_indices = @transform_0, window_bounds = array<i64: 1, 10, 10, 8>}, {transform_indices = @transform_1, window_bounds = array<i64: 9, 8, 128>}, {transform_indices = @transform_2, window_bounds = array<i64: 1, 128>}, {transform_indices = @transform_3, window_bounds = array<i64: 1, 64, 128>}]} {
    %cst = arith.constant 0.000000e+00 : f32
    %0 = vector.broadcast %cst : f32 to vector<64x128xf32>
    %c0 = arith.constant 0 : index
    %c0_0 = arith.constant 0 : index
    %c0_1 = arith.constant 0 : index
    %c0_2 = arith.constant 0 : index
    %1 = vector.load %arg2[%c0, %c0_0, %c0_1, %c0_2] : memref<1x10x10x8xbf16, #tpu.memory_space<vmem>>, vector<1x8x8x8xbf16>
    %2 = vector.shape_cast %1 : vector<1x8x8x8xbf16> to vector<8x8x8xbf16>
    %3 = vector.shape_cast %2 : vector<8x8x8xbf16> to vector<64x8xbf16>
    %c0_3 = arith.constant 0 : index
    %c0_4 = arith.constant 0 : index
    %c0_5 = arith.constant 0 : index
    %4 = vector.load %arg3[%c0_3, %c0_4, %c0_5] : memref<9x8x128xbf16, #tpu.memory_space<vmem>>, vector<1x8x128xbf16>
    %5 = vector.shape_cast %4 : vector<1x8x128xbf16> to vector<8x128xbf16>
    %cst_6 = arith.constant dense<0.000000e+00> : vector<64x128xf32>
    %6 = tpu.matmul %3, %5, %cst_6 {dimension_numbers = #tpu.dot_dimension_numbers<[1], [0], [0], [1], [0, 0, 1, 1], [], []>} : vector<64x8xbf16>, vector<8x128xbf16>, vector<64x128xf32> -> vector<64x128xf32>
    %7 = arith.addf %0, %6 : vector<64x128xf32>
    %c0_7 = arith.constant 0 : index
    %c0_8 = arith.constant 0 : index
    %c1 = arith.constant 1 : index
    %c0_9 = arith.constant 0 : index
    %8 = vector.load %arg2[%c0_7, %c0_8, %c1, %c0_9] : memref<1x10x10x8xbf16, #tpu.memory_space<vmem>>, vector<1x8x8x8xbf16>
    %9 = vector.shape_cast %8 : vector<1x8x8x8xbf16> to vector<8x8x8xbf16>
    %10 = vector.shape_cast %9 : vector<8x8x8xbf16> to vector<64x8xbf16>
    %c1_10 = arith.constant 1 : index
    %c0_11 = arith.constant 0 : index
    %c0_12 = arith.constant 0 : index
    %11 = vector.load %arg3[%c1_10, %c0_11, %c0_12] : memref<9x8x128xbf16, #tpu.memory_space<vmem>>, vector<1x8x128xbf16>
    %12 = vector.shape_cast %11 : vector<1x8x128xbf16> to vector<8x128xbf16>
    %cst_13 = arith.constant dense<0.000000e+00> : vector<64x128xf32>
    %13 = tpu.matmul %10, %12, %cst_13 {dimension_numbers = #tpu.dot_dimension_numbers<[1], [0], [0], [1], [0, 0, 1, 1], [], []>} : vector<64x8xbf16>, vector<8x128xbf16>, vector<64x128xf32> -> vector<64x128xf32>
    %14 = arith.addf %7, %13 : vector<64x128xf32>
    %c0_14 = arith.constant 0 : index
    %c0_15 = arith.constant 0 : index
    %c2 = arith.constant 2 : index
    %c0_16 = arith.constant 0 : index
    %15 = vector.load %arg2[%c0_14, %c0_15, %c2, %c0_16] : memref<1x10x10x8xbf16, #tpu.memory_space<vmem>>, vector<1x8x8x8xbf16>
    %16 = vector.shape_cast %15 : vector<1x8x8x8xbf16> to vector<8x8x8xbf16>
    %17 = vector.shape_cast %16 : vector<8x8x8xbf16> to vector<64x8xbf16>
    %c2_17 = arith.constant 2 : index
    %c0_18 = arith.constant 0 : index
    %c0_19 = arith.constant 0 : index
    %18 = vector.load %arg3[%c2_17, %c0_18, %c0_19] : memref<9x8x128xbf16, #tpu.memory_space<vmem>>, vector<1x8x128xbf16>
    %19 = vector.shape_cast %18 : vector<1x8x128xbf16> to vector<8x128xbf16>
    %cst_20 = arith.constant dense<0.000000e+00> : vector<64x128xf32>
    %20 = tpu.matmul %17, %19, %cst_20 {dimension_numbers = #tpu.dot_dimension_numbers<[1], [0], [0], [1], [0, 0, 1, 1], [], []>} : vector<64x8xbf16>, vector<8x128xbf16>, vector<64x128xf32> -> vector<64x128xf32>
    %21 = arith.addf %14, %20 : vector<64x128xf32>
    %c0_21 = arith.constant 0 : index
    %c1_22 = arith.constant 1 : index
    %c0_23 = arith.constant 0 : index
    %c0_24 = arith.constant 0 : index
    %22 = vector.load %arg2[%c0_21, %c1_22, %c0_23, %c0_24] : memref<1x10x10x8xbf16, #tpu.memory_space<vmem>>, vector<1x8x8x8xbf16>
    %23 = vector.shape_cast %22 : vector<1x8x8x8xbf16> to vector<8x8x8xbf16>
    %24 = vector.shape_cast %23 : vector<8x8x8xbf16> to vector<64x8xbf16>
    %c3 = arith.constant 3 : index
    %c0_25 = arith.constant 0 : index
    %c0_26 = arith.constant 0 : index
    %25 = vector.load %arg3[%c3, %c0_25, %c0_26] : memref<9x8x128xbf16, #tpu.memory_space<vmem>>, vector<1x8x128xbf16>
    %26 = vector.shape_cast %25 : vector<1x8x128xbf16> to vector<8x128xbf16>
    %cst_27 = arith.constant dense<0.000000e+00> : vector<64x128xf32>
    %27 = tpu.matmul %24, %26, %cst_27 {dimension_numbers = #tpu.dot_dimension_numbers<[1], [0], [0], [1], [0, 0, 1, 1], [], []>} : vector<64x8xbf16>, vector<8x128xbf16>, vector<64x128xf32> -> vector<64x128xf32>
    %28 = arith.addf %21, %27 : vector<64x128xf32>
    %c0_28 = arith.constant 0 : index
    %c1_29 = arith.constant 1 : index
    %c1_30 = arith.constant 1 : index
    %c0_31 = arith.constant 0 : index
    %29 = vector.load %arg2[%c0_28, %c1_29, %c1_30, %c0_31] : memref<1x10x10x8xbf16, #tpu.memory_space<vmem>>, vector<1x8x8x8xbf16>
    %30 = vector.shape_cast %29 : vector<1x8x8x8xbf16> to vector<8x8x8xbf16>
    %31 = vector.shape_cast %30 : vector<8x8x8xbf16> to vector<64x8xbf16>
    %c4 = arith.constant 4 : index
    %c0_32 = arith.constant 0 : index
    %c0_33 = arith.constant 0 : index
    %32 = vector.load %arg3[%c4, %c0_32, %c0_33] : memref<9x8x128xbf16, #tpu.memory_space<vmem>>, vector<1x8x128xbf16>
    %33 = vector.shape_cast %32 : vector<1x8x128xbf16> to vector<8x128xbf16>
    %cst_34 = arith.constant dense<0.000000e+00> : vector<64x128xf32>
    %34 = tpu.matmul %31, %33, %cst_34 {dimension_numbers = #tpu.dot_dimension_numbers<[1], [0], [0], [1], [0, 0, 1, 1], [], []>} : vector<64x8xbf16>, vector<8x128xbf16>, vector<64x128xf32> -> vector<64x128xf32>
    %35 = arith.addf %28, %34 : vector<64x128xf32>
    %c0_35 = arith.constant 0 : index
    %c1_36 = arith.constant 1 : index
    %c2_37 = arith.constant 2 : index
    %c0_38 = arith.constant 0 : index
    %36 = vector.load %arg2[%c0_35, %c1_36, %c2_37, %c0_38] : memref<1x10x10x8xbf16, #tpu.memory_space<vmem>>, vector<1x8x8x8xbf16>
    %37 = vector.shape_cast %36 : vector<1x8x8x8xbf16> to vector<8x8x8xbf16>
    %38 = vector.shape_cast %37 : vector<8x8x8xbf16> to vector<64x8xbf16>
    %c5 = arith.constant 5 : index
    %c0_39 = arith.constant 0 : index
    %c0_40 = arith.constant 0 : index
    %39 = vector.load %arg3[%c5, %c0_39, %c0_40] : memref<9x8x128xbf16, #tpu.memory_space<vmem>>, vector<1x8x128xbf16>
    %40 = vector.shape_cast %39 : vector<1x8x128xbf16> to vector<8x128xbf16>
    %cst_41 = arith.constant dense<0.000000e+00> : vector<64x128xf32>
    %41 = tpu.matmul %38, %40, %cst_41 {dimension_numbers = #tpu.dot_dimension_numbers<[1], [0], [0], [1], [0, 0, 1, 1], [], []>} : vector<64x8xbf16>, vector<8x128xbf16>, vector<64x128xf32> -> vector<64x128xf32>
    %42 = arith.addf %35, %41 : vector<64x128xf32>
    %c0_42 = arith.constant 0 : index
    %c2_43 = arith.constant 2 : index
    %c0_44 = arith.constant 0 : index
    %c0_45 = arith.constant 0 : index
    %43 = vector.load %arg2[%c0_42, %c2_43, %c0_44, %c0_45] : memref<1x10x10x8xbf16, #tpu.memory_space<vmem>>, vector<1x8x8x8xbf16>
    %44 = vector.shape_cast %43 : vector<1x8x8x8xbf16> to vector<8x8x8xbf16>
    %45 = vector.shape_cast %44 : vector<8x8x8xbf16> to vector<64x8xbf16>
    %c6 = arith.constant 6 : index
    %c0_46 = arith.constant 0 : index
    %c0_47 = arith.constant 0 : index
    %46 = vector.load %arg3[%c6, %c0_46, %c0_47] : memref<9x8x128xbf16, #tpu.memory_space<vmem>>, vector<1x8x128xbf16>
    %47 = vector.shape_cast %46 : vector<1x8x128xbf16> to vector<8x128xbf16>
    %cst_48 = arith.constant dense<0.000000e+00> : vector<64x128xf32>
    %48 = tpu.matmul %45, %47, %cst_48 {dimension_numbers = #tpu.dot_dimension_numbers<[1], [0], [0], [1], [0, 0, 1, 1], [], []>} : vector<64x8xbf16>, vector<8x128xbf16>, vector<64x128xf32> -> vector<64x128xf32>
    %49 = arith.addf %42, %48 : vector<64x128xf32>
    %c0_49 = arith.constant 0 : index
    %c2_50 = arith.constant 2 : index
    %c1_51 = arith.constant 1 : index
    %c0_52 = arith.constant 0 : index
    %50 = vector.load %arg2[%c0_49, %c2_50, %c1_51, %c0_52] : memref<1x10x10x8xbf16, #tpu.memory_space<vmem>>, vector<1x8x8x8xbf16>
    %51 = vector.shape_cast %50 : vector<1x8x8x8xbf16> to vector<8x8x8xbf16>
    %52 = vector.shape_cast %51 : vector<8x8x8xbf16> to vector<64x8xbf16>
    %c7 = arith.constant 7 : index
    %c0_53 = arith.constant 0 : index
    %c0_54 = arith.constant 0 : index
    %53 = vector.load %arg3[%c7, %c0_53, %c0_54] : memref<9x8x128xbf16, #tpu.memory_space<vmem>>, vector<1x8x128xbf16>
    %54 = vector.shape_cast %53 : vector<1x8x128xbf16> to vector<8x128xbf16>
    %cst_55 = arith.constant dense<0.000000e+00> : vector<64x128xf32>
    %55 = tpu.matmul %52, %54, %cst_55 {dimension_numbers = #tpu.dot_dimension_numbers<[1], [0], [0], [1], [0, 0, 1, 1], [], []>} : vector<64x8xbf16>, vector<8x128xbf16>, vector<64x128xf32> -> vector<64x128xf32>
    %56 = arith.addf %49, %55 : vector<64x128xf32>
    %c0_56 = arith.constant 0 : index
    %c2_57 = arith.constant 2 : index
    %c2_58 = arith.constant 2 : index
    %c0_59 = arith.constant 0 : index
    %57 = vector.load %arg2[%c0_56, %c2_57, %c2_58, %c0_59] : memref<1x10x10x8xbf16, #tpu.memory_space<vmem>>, vector<1x8x8x8xbf16>
    %58 = vector.shape_cast %57 : vector<1x8x8x8xbf16> to vector<8x8x8xbf16>
    %59 = vector.shape_cast %58 : vector<8x8x8xbf16> to vector<64x8xbf16>
    %c8 = arith.constant 8 : index
    %c0_60 = arith.constant 0 : index
    %c0_61 = arith.constant 0 : index
    %60 = vector.load %arg3[%c8, %c0_60, %c0_61] : memref<9x8x128xbf16, #tpu.memory_space<vmem>>, vector<1x8x128xbf16>
    %61 = vector.shape_cast %60 : vector<1x8x128xbf16> to vector<8x128xbf16>
    %cst_62 = arith.constant dense<0.000000e+00> : vector<64x128xf32>
    %62 = tpu.matmul %59, %61, %cst_62 {dimension_numbers = #tpu.dot_dimension_numbers<[1], [0], [0], [1], [0, 0, 1, 1], [], []>} : vector<64x8xbf16>, vector<8x128xbf16>, vector<64x128xf32> -> vector<64x128xf32>
    %63 = arith.addf %56, %62 : vector<64x128xf32>
    %c0_63 = arith.constant 0 : index
    %c0_64 = arith.constant 0 : index
    %64 = vector.load %arg4[%c0_63, %c0_64] : memref<1x128xf32, #tpu.memory_space<vmem>>, vector<1x128xf32>
    %65 = vector.broadcast %64 : vector<1x128xf32> to vector<64x128xf32>
    %66 = arith.addf %63, %65 : vector<64x128xf32>
    %cst_65 = arith.constant 0.000000e+00 : f32
    %67 = vector.broadcast %cst_65 : f32 to vector<64x128xf32>
    %68 = arith.maximumf %66, %67 : vector<64x128xf32>
    %c0_66 = arith.constant 0 : index
    %c0_67 = arith.constant 0 : index
    %c0_68 = arith.constant 0 : index
    %69 = vector.load %arg5[%c0_66, %c0_67, %c0_68] : memref<1x64x128xf32, #tpu.memory_space<vmem>>, vector<1x64x128xf32>
    %70 = vector.shape_cast %69 : vector<1x64x128xf32> to vector<64x128xf32>
    %71 = vector.shape_cast %68 : vector<64x128xf32> to vector<1x64x128xf32>
    tpu.vector_store %arg5[%c0_66, %c0_67, %c0_68], %71 {strides = array<i32>} : memref<1x64x128xf32, #tpu.memory_space<vmem>>, vector<1x64x128xf32>,
    return
  }
  func.func @transform_0(%arg0: i32, %arg1: i32) -> (i32, i32, i32, i32) {
    %c0_i32 = arith.constant 0 : i32
    %c0_i32_0 = arith.constant 0 : i32
    %c0_i32_1 = arith.constant 0 : i32
    %c0_i32_2 = arith.constant 0 : i32
    return %arg0, %c0_i32, %c0_i32_0, %c0_i32_1 : i32, i32, i32, i32
  }
  func.func @transform_1(%arg0: i32, %arg1: i32) -> (i32, i32, i32) {
    %c0_i32 = arith.constant 0 : i32
    %c0_i32_0 = arith.constant 0 : i32
    %c0_i32_1 = arith.constant 0 : i32
    return %c0_i32, %c0_i32_0, %arg1 : i32, i32, i32
  }
  func.func @transform_2(%arg0: i32, %arg1: i32) -> (i32, i32) {
    %c0_i32 = arith.constant 0 : i32
    %c0_i32_0 = arith.constant 0 : i32
    return %c0_i32, %arg1 : i32, i32
  }
  func.func @transform_3(%arg0: i32, %arg1: i32) -> (i32, i32, i32) {
    %c0_i32 = arith.constant 0 : i32
    %c0_i32_0 = arith.constant 0 : i32
    return %arg0, %c0_i32, %arg1 : i32, i32, i32
  }
}

</mosaic_0001>

<bundles_post_ra>
// kernel: vanilla_block_forward.2
= control target key start
LH: loop header
LB: loop body
LE: loop exit
PB: predicated region body
PF: predicated region fallthrough
CT: control target
= control target key end

     0   :  { %s1776_s12 = smov 0   ;;  %s1778_s13 = smov 0   ;;  %s2096_s0 = inlined_call_operand.vmem [shape: bf16[2,40,10,4], index: 0, kind: input, shape index: {}]   ;;  %s2097_s1 = inlined_call_operand.vmem [shape: bf16[9,4,128], index: 1, kind: input, shape index: {}]   ;;  %s2098_s2 = inlined_call_operand.vmem [shape: f32[1,128], index: 2, kind: input, shape index: {}]   ;;  %s2099_s3 = inlined_call_operand.vmem [shape: bf16[2,64,128], index: 3, kind: output, shape index: {}]  }
   0x1   :  { %s1780_s14 = smov 0  }
   0x2 LB: > { %s25_s15 = sadd.s32 1, %s1750_s13  ;;  %p1437_p0 = scmp.ge.s32.totalorder %s1754_s14, 1  ;;  %s1754_s14 = sphi %s1780_s14, %s13_s14   ;;  %s1750_s13 = sphi %s1778_s13, %s2103_s13   ;;  %s1746_s12 = sphi %s1776_s12, %s2102_s12  }
   0x3   : > { %p27_p1 = scmp.ge.s32.totalorder %s25_s15, 2  ;;  %p168_p2 = scmp.lt.s32.totalorder %s1754_s14, 3 }
   0x5   : > { %s2105_s15 = smov (%p27_p1, %s25_s15), 0  ;;  %p169_p3 = pnand %p1437_p0, %p168_p2 }
   0x6   : > { %p202_p4 = scmp.lt.s32.totalorder (!%p169_p3), %s1746_s12, 1 }
   0x7   : > { %172 = sbr.rel (%p169_p3) target bundleno = 302 (0x12e), region = 32 }
   0xc   : > { %v1449_v0 = vld [vmem:[%s2097_s1 + $0x2] sm:$0x3]  ;;  %vm276_vm0 = vcmask 1041408   ;;  %v1490_v2 = vld [vmem:[%s2097_s1 + $0x4] sm:$0x3]  ;;  %s2107_s12 = smov (!%p202_p4, %s1746_s12), 1 }
   0xd   : > { %v278_v1 = vsel %vm276_vm0, %v1449_v0, 0  ;;  %v1503_v3 = vld [vmem:[%s2097_s1 + $0x6] sm:$0x3]  ;;  %v531_v4 = vsel %vm276_vm0, %v1490_v2, 0  ;;  %v231_v6 = vld [vmem:[%s2097_s1] sm:$0x3] }
   0xe   : > { %1703 = vmatpush.bf16.msra.mxu1 %v278_v1  ;;  %1704 = vmatpush.bf16.msra.mxu2 %v278_v1  ;;  %v614_v5 = vsel %vm276_vm0, %v1503_v3, 0  ;;  %v342_v7 = vsel %vm276_vm0, %v231_v6, 0  ;;  %v1532_v8 = vld [vmem:[%s2097_s1 + $0x8] sm:$0x3]  ;;  %s1706_s26 = smul.u32 320, %s2107_s12  ;;  %vm263_vm1 = vcmask 31744  }
   0xf   : > { %1705 = vmatpush.bf16.msra.mxu3 %v278_v1  ;;  %287 = vmatpush.bf16.msra.mxu0 %v278_v1  ;;  %v697_v9 = vsel %vm276_vm0, %v1532_v8, 0  ;;  %v1582_v10 = vld [vmem:[%s2097_s1 + $0xc] sm:$0x3]  ;;  %v1611_v11 = vld [vmem:[%s2097_s1 + $0xe] sm:$0x3]  ;;  %s1655_s17 = sshll.u32 %s2107_s12, 5 }
  0x10   : > { %s1823_s4 = scalar_lea.vmem %s2096_s0, %s1706_s26  ;;  %v1569_v12 = vld [vmem:[%s2097_s1 + $0xa] sm:$0x3]  ;;  %v974_v24 = vsel %vm276_vm0, %v1582_v10, 0  ;;  %v1057_v28 = vsel %vm276_vm0, %v1611_v11, 0  ;;  %v1648_v38 = vld [vmem:[%s2097_s1 + $0x10] sm:$0x3]  ;;  %s2062_s20 = scalar_lea.vmem %s2099_s3, %s1655_s17 }
  0x11   : > { %v1456_v13 = vld [vmem:[%s1823_s4 + $0x60] sm:$0xf]  ;;  %v1661_v14 = vld [vmem:[%s1823_s4 + $0x64] sm:$0xf0]  ;;  %v1460_v15 = vld [vmem:[%s1823_s4 + $0x70] sm:$0xf] }
  0x12   : > { %540 = vmatpush.bf16.msrb.mxu2 %v531_v4  ;;  %351 = vmatpush.bf16.msrb.mxu1 %v342_v7  ;;  %v1457_v16 = vor.u32 %v1661_v14, %v1456_v13  ;;  %v1662_v17 = vld [vmem:[%s1823_s4 + $0x74] sm:$0xf0]  ;;  %v1464_v18 = vld [vmem:[%s1823_s4 + $0x80] sm:$0xf]  ;;  %v1663_v19 = vld [vmem:[%s1823_s4 + $0x84] sm:$0xf0] }
  0x13   : > { %623 = vmatpush.bf16.msrb.mxu3 %v614_v5  ;;  %706 = vmatpush.bf16.msrb.mxu0 %v697_v9  ;;  %v1461_v20 = vor.u32 %v1662_v17, %v1460_v15  ;;  %v1465_v21 = vor.u32 %v1663_v19, %v1464_v18  ;;  %v1452_v22 = vld [vmem:[%s1823_s4 + $0x50] sm:$0xf]  ;;  %v1660_v23 = vld [vmem:[%s1823_s4 + $0x54] sm:$0xf0]  ;;  %v373_v26 = vld [vmem:[%s1823_s4] sm:$0xf] }
  0x14   : > { %1467 = vmatmul.msk.bf16.vlgmr.msra.gmra.mxu1 %vm263_vm1, %v1457_v16  ;;  %v1453_v25 = vor.u32 %v1660_v23, %v1452_v22  ;;  %v374_v27 = vld [vmem:[%s1823_s4 + $0x4] sm:$0x1]  ;;  %v891_v29 = vsel %vm276_vm0, %v1569_v12, 0  ;;  %v375_v30 = vld [vmem:[%s1823_s4 + $0x8] sm:$0xf]  ;;  %v393_v32 = vshrl.u32 %v373_v26, 16 }
  0x15   : > { %1468 = vmatmul.msk.bf16.vlgmr.msra.gmra.mxu2 %vm263_vm1, %v1461_v20  ;;  %1469 = vmatmul.msk.bf16.vlgmr.msra.gmra.mxu3 %vm263_vm1, %v1465_v21  ;;  %v376_v31 = vld [vmem:[%s1823_s4 + $0xc] sm:$0x1]  ;;  %v396_v33 = vshll.u32 %v373_v26, 16  ;;  %v402_v34 = vshll.u32 %v374_v27, 16  ;;  %v407_v35 = vshrl.u32 %v375_v30, 16  ;;  %v410_v36 = vshll.u32 %v375_v30, 16 }
  0x16   : > { %1466 = vmatmul.msk.bf16.vlgmr.msra.gmra.mxu0 %vm263_vm1, %v1453_v25  ;;  %v416_v37 = vshll.u32 %v376_v31, 16  ;;  %983 = vmatpush.bf16.msra.mxu2 %v974_v24  ;;  %vm389_vm2 = vsmask.f32 3328  ;;  %vm390_vm3 = vsmask.f32 7440  ;;  %v395_v39 = vrot.slane %v393_v32, 4 }
  0x17   : > { %v398_v40 = vrot.slane %v396_v33, 5  ;;  %1066 = vmatpush.bf16.msra.mxu3 %v1057_v28  ;;  %900 = vmatpush.bf16.msra.mxu1 %v891_v29  ;;  %v409_v41 = vrot.slane %v407_v35, 4  ;;  %v412_v42 = vrot.slane %v410_v36, 5  ;;  %v404_v44 = vrot.slane %v402_v34, 5  ;;  %vm1854_vm4 = vmor %vm389_vm2, %vm390_vm3  ;;  %v377_v49 = vld [vmem:[%s1823_s4 + $0x10] sm:$0xf] }
  0x18   : > { %v1251_v45 = vsel %vm276_vm0, %v1648_v38, 0  ;;  %v418_v48 = vrot.slane %v416_v37, 5  ;;  %v379_v50 = vld [vmem:[%s1823_s4 + $0x18] sm:$0xf]  ;;  %v1472_v51 = vld [vmem:[%s1823_s4] sm:$0xf] }
  0x19   : > { %v399_v43 = vor.u32 %v398_v40, %v395_v39  ;;  %v413_v47 = vor.u32 %v412_v42, %v409_v41  ;;  %1260 = vmatpush.bf16.msra.mxu0 %v1251_v45  ;;  %v421_v53 = vshrl.u32 %v377_v49, 16  ;;  %v424_v54 = vshll.u32 %v377_v49, 16  ;;  %v1656_v55 = vld [vmem:[%s1823_s4 + $0x4] sm:$0xf0]  ;;  %v1506_v60 = vld [vmem:[%s1823_s4 + $0xa0] sm:$0xf] }
  0x1a   : > { %v435_v57 = vshrl.u32 %v379_v50, 16  ;;  %v438_v58 = vshll.u32 %v379_v50, 16  ;;  %v1664_v61 = vld [vmem:[%s1823_s4 + $0xa4] sm:$0xf0]  ;;  %v1535_v2 = vld [vmem:[%s1823_s4 + $0xf0] sm:$0xf]  ;;  %v1473_v9 = vor.u32 %v1656_v55, %v1472_v51 }
  0x1b   : > { %v400_v52 = vrot.slane %v399_v43, 4  ;;  %v414_v56 = vrot.slane %v413_v47, 4  ;;  %v423_v62 = vrot.slane %v421_v53, 4  ;;  %v426_v63 = vrot.slane %v424_v54, 5  ;;  %v1668_v3 = vld [vmem:[%s1823_s4 + $0xf4] sm:$0xf0] }
  0x1c   : > { %v437_v4 = vrot.slane %v435_v57, 4  ;;  %v440_v5 = vrot.slane %v438_v58, 5  ;;  %v378_v7 = vld [vmem:[%s1823_s4 + $0x14] sm:$0x1]  ;;  %v380_v8 = vld [vmem:[%s1823_s4 + $0x1c] sm:$0x1]  ;;  %v1507_v11 = vor.u32 %v1664_v61, %v1506_v60  ;;  %v1536_v12 = vor.u32 %v1668_v3, %v1535_v2 }
  0x1d   : > { %v405_v59 = vsel %vm1854_vm4, %v400_v52, %v404_v44  ;;  %v419_v0 = vsel %vm1854_vm4, %v414_v56, %v418_v48  ;;  %v427_v13 = vor.u32 %v426_v63, %v423_v62  ;;  %v430_v14 = vshll.u32 %v378_v7, 16  ;;  %v381_v21 = vld [vmem:[%s1823_s4 + $0x20] sm:$0xf]  ;;  %v383_v22 = vld [vmem:[%s1823_s4 + $0x28] sm:$0xf] }
  0x1e   : > { %v506_v1 = vunpack.c.l.b16 %v405_v59  ;;  %v507_v6 = vunpack.c.l.b16 %v419_v0  ;;  %v441_v15 = vor.u32 %v440_v5, %v437_v4  ;;  %v444_v16 = vshll.u32 %v380_v8, 16  ;;  %v1476_v29 = vld [vmem:[%s1823_s4 + $0x10] sm:$0xf]  ;;  %v1657_v30 = vld [vmem:[%s1823_s4 + $0x14] sm:$0xf0] }
  0x1f   : > { %v428_v17 = vrot.slane %v427_v13, 4  ;;  %v432_v18 = vrot.slane %v430_v14, 5  ;;  %v449_v23 = vshrl.u32 %v381_v21, 16  ;;  %v452_v24 = vshll.u32 %v381_v21, 16  ;;  %v1510_v33 = vld [vmem:[%s1823_s4 + $0xb0] sm:$0xf] }
  0x20   : > { %v514_v10 = vpack.c.b16 %v507_v6, %v506_v1  ;;  %v442_v19 = vrot.slane %v441_v15, 4  ;;  %v446_v20 = vrot.slane %v444_v16, 5  ;;  %v463_v27 = vshrl.u32 %v383_v22, 16  ;;  %v1665_v34 = vld [vmem:[%s1823_s4 + $0xb4] sm:$0xf0] }
  0x21   : > { %v433_v25 = vsel %vm1854_vm4, %v428_v17, %v432_v18  ;;  %v466_v28 = vshll.u32 %v383_v22, 16  ;;  %v1539_v35 = vld [vmem:[%s1823_s4 + $0x100] sm:$0xf]  ;;  %v1669_v36 = vld [vmem:[%s1823_s4 + $0x104] sm:$0xf0]  ;;  %v451_v37 = vrot.slane %v449_v23, 4  ;;  %v1477_v43 = vor.u32 %v1657_v30, %v1476_v29 }
  0x22   : > { %v447_v26 = vsel %vm1854_vm4, %v442_v19, %v446_v20  ;;  %v508_v31 = vunpack.c.l.b16 %v433_v25  ;;  %v454_v38 = vrot.slane %v452_v24, 5  ;;  %v465_v39 = vrot.slane %v463_v27, 4  ;;  %v382_v41 = vld [vmem:[%s1823_s4 + $0x24] sm:$0x1]  ;;  %v384_v42 = vld [vmem:[%s1823_s4 + $0x2c] sm:$0x1] }
  0x23   : > { %v509_v32 = vunpack.c.l.b16 %v447_v26  ;;  %v468_v40 = vrot.slane %v466_v28, 5  ;;  %v1511_v45 = vor.u32 %v1665_v34, %v1510_v33  ;;  %v1540_v47 = vor.u32 %v1669_v36, %v1539_v35  ;;  %v385_v52 = vld [vmem:[%s1823_s4 + $0x30] sm:$0xf]  ;;  %v387_v53 = vld [vmem:[%s1823_s4 + $0x38] sm:$0xf] }
  0x24   : > { %1486 = vmatmul.msk.bf16.vlgmr.msrb.gmra.mxu1 %vm263_vm1, %v1473_v9  ;;  %v455_v48 = vor.u32 %v454_v38, %v451_v37  ;;  %v458_v49 = vshll.u32 %v382_v41, 16  ;;  %v472_v51 = vshll.u32 %v384_v42, 16  ;;  %v477_v58 = vshrl.u32 %v385_v52, 16  ;;  %v386_v4 = vld [vmem:[%s1823_s4 + $0x34] sm:$0x1] }
  0x25   : > { %1491 = vmatmul.msk.bf16.vlgmr.msrb.gmra.mxu2 %vm263_vm1, %v514_v10  ;;  %1520 = vmatmul.msk.bf16.vlgmr.msrb.gmra.mxu3 %vm263_vm1, %v1507_v11  ;;  %v515_v44 = vpack.c.b16 %v509_v32, %v508_v31  ;;  %v469_v50 = vor.u32 %v468_v40, %v465_v39  ;;  %v480_v59 = vshll.u32 %v385_v52, 16  ;;  %v491_v60 = vshrl.u32 %v387_v53, 16  ;;  %v388_v5 = vld [vmem:[%s1823_s4 + $0x3c] sm:$0x1]  ;;  %v1480_v6 = vld [vmem:[%s1823_s4 + $0x20] sm:$0xf] }
  0x26   : > { %1549 = vmatmul.msk.bf16.vlgmr.msrb.gmra.mxu0 %vm263_vm1, %v1536_v12  ;;  %v456_v54 = vrot.slane %v455_v48, 4  ;;  %v460_v55 = vrot.slane %v458_v49, 5  ;;  %v474_v57 = vrot.slane %v472_v51, 5  ;;  %v494_v61 = vshll.u32 %v387_v53, 16  ;;  %v1658_v7 = vld [vmem:[%s1823_s4 + $0x24] sm:$0xf0] }
  0x27   : > { %v470_v56 = vrot.slane %v469_v50, 4  ;;  %v479_v0 = vrot.slane %v477_v58, 4  ;;  %v482_v1 = vrot.slane %v480_v59, 5  ;;  %v493_v2 = vrot.slane %v491_v60, 4  ;;  %v1514_v10 = vld [vmem:[%s1823_s4 + $0xc0] sm:$0xf] }
  0x28   : > { %v461_v62 = vsel %vm1854_vm4, %v456_v54, %v460_v55  ;;  %v496_v3 = vrot.slane %v494_v61, 5  ;;  %v1666_v11 = vld [vmem:[%s1823_s4 + $0xc4] sm:$0xf0]  ;;  %v1543_v12 = vld [vmem:[%s1823_s4 + $0x110] sm:$0xf]  ;;  %v486_v15 = vshll.u32 %v386_v4, 16  ;;  %v1481_v18 = vor.u32 %v1658_v7, %v1480_v6 }
  0x29   : > { %v475_v63 = vsel %vm1854_vm4, %v470_v56, %v474_v57  ;;  %v510_v8 = vunpack.c.l.b16 %v461_v62  ;;  %v1670_v13 = vld [vmem:[%s1823_s4 + $0x114] sm:$0xf0]  ;;  %v483_v14 = vor.u32 %v482_v1, %v479_v0  ;;  %v500_v17 = vshll.u32 %v388_v5, 16  ;;  %v1553_v26 = vld [vmem:[%s1823_s4 + $0xa0] sm:$0xf] }
  0x2a   : > { %v511_v9 = vunpack.c.l.b16 %v475_v63  ;;  %v497_v16 = vor.u32 %v496_v3, %v493_v2  ;;  %v1515_v20 = vor.u32 %v1666_v11, %v1514_v10  ;;  %v1544_v21 = vor.u32 %v1670_v13, %v1543_v12  ;;  %v1555_v27 = vld [vmem:[%s1823_s4 + $0xa8] sm:$0xf]  ;;  %v1634_v29 = vld [vmem:[%s1823_s4 + $0x10] sm:$0xf]  ;;  %v1659_v41 = vld [vmem:[%s1823_s4 + $0x34] sm:$0xf0] }
  0x2b   : > { %v484_v22 = vrot.slane %v483_v14, 4  ;;  %v488_v23 = vrot.slane %v486_v15, 5  ;;  %v502_v25 = vrot.slane %v500_v17, 5  ;;  %v1632_v28 = vld [vmem:[%s1823_s4 + $0x8] sm:$0xf]  ;;  %v753_v32 = vshrl.u32 %v1553_v26, 16 }
  0x2c   : > { %v516_v19 = vpack.c.b16 %v511_v9, %v510_v8  ;;  %v498_v24 = vrot.slane %v497_v16, 4  ;;  %v756_v33 = vshll.u32 %v1553_v26, 16  ;;  %v767_v34 = vshrl.u32 %v1555_v27, 16  ;;  %v1484_v40 = vld [vmem:[%s1823_s4 + $0x30] sm:$0xf] }
  0x2d   : > { %v489_v30 = vsel %vm1854_vm4, %v484_v22, %v488_v23  ;;  %v770_v35 = vshll.u32 %v1555_v27, 16  ;;  %v1113_v36 = vshrl.u32 %v1632_v28, 16  ;;  %v1116_v37 = vshll.u32 %v1632_v28, 16  ;;  %v1556_v52 = vld [vmem:[%s1823_s4 + $0xac] sm:$0x1] }
  0x2e   : > { %v503_v31 = vsel %vm1854_vm4, %v498_v24, %v502_v25  ;;  %v1127_v38 = vshrl.u32 %v1634_v29, 16  ;;  %v1130_v39 = vshll.u32 %v1634_v29, 16  ;;  %v512_v42 = vunpack.c.l.b16 %v489_v30  ;;  %v1633_v57 = vld [vmem:[%s1823_s4 + $0xc] sm:$0x1]  ;;  %v1635_v58 = vld [vmem:[%s1823_s4 + $0x14] sm:$0x1] }
  0x2f   : > { %v755_v48 = vrot.slane %v753_v32, 4  ;;  %v758_v49 = vrot.slane %v756_v33, 5  ;;  %v769_v50 = vrot.slane %v767_v34, 4  ;;  %v772_v51 = vrot.slane %v770_v35, 5  ;;  %v1547_v62 = vld [vmem:[%s1823_s4 + $0x120] sm:$0xf] }
  0x30   : > { %v1115_v53 = vrot.slane %v1113_v36, 4  ;;  %v1118_v54 = vrot.slane %v1116_v37, 5  ;;  %v1129_v55 = vrot.slane %v1127_v38, 4  ;;  %v1132_v56 = vrot.slane %v1130_v39, 5  ;;  %v1671_v63 = vld [vmem:[%s1823_s4 + $0x124] sm:$0xf0] }
  0x31   : > { %v1485_v59 = vor.u32 %v1659_v41, %v1484_v40  ;;  %v759_v0 = vor.u32 %v758_v49, %v755_v48  ;;  %v773_v2 = vor.u32 %v772_v51, %v769_v50  ;;  %v776_v3 = vshll.u32 %v1556_v52, 16  ;;  %v1557_v9 = vld [vmem:[%s1823_s4 + $0xb0] sm:$0xf]  ;;  %v1559_v10 = vld [vmem:[%s1823_s4 + $0xb8] sm:$0xf] }
  0x32   : > { %v1119_v4 = vor.u32 %v1118_v54, %v1115_v53  ;;  %v1122_v5 = vshll.u32 %v1633_v57, 16  ;;  %v1133_v6 = vor.u32 %v1132_v56, %v1129_v55  ;;  %v1136_v7 = vshll.u32 %v1635_v58, 16  ;;  %v1636_v23 = vld [vmem:[%s1823_s4 + $0x18] sm:$0xf]  ;;  %v1638_v24 = vld [vmem:[%s1823_s4 + $0x20] sm:$0xf] }
  0x33   : > { %v1548_v8 = vor.u32 %v1671_v63, %v1547_v62  ;;  %v760_v11 = vrot.slane %v759_v0, 4  ;;  %v774_v13 = vrot.slane %v773_v2, 4  ;;  %v778_v14 = vrot.slane %v776_v3, 5  ;;  %v1558_v29 = vld [vmem:[%s1823_s4 + $0xb4] sm:$0x1] }
  0x34   : > { %1487 = vmatmul.msk.bf16.gmra.mxu1 %vm263_vm1, %v1477_v43  ;;  %v513_v43 = vunpack.c.l.b16 %v503_v31  ;;  %v1120_v15 = vrot.slane %v1119_v4, 4  ;;  %v1124_v16 = vrot.slane %v1122_v5, 5  ;;  %v1134_v17 = vrot.slane %v1133_v6, 4  ;;  %v1560_v34 = vld [vmem:[%s1823_s4 + $0xbc] sm:$0x1] }
  0x35   : > { %1492 = vmatmul.msk.bf16.gmra.mxu2 %vm263_vm1, %v515_v44  ;;  %1521 = vmatmul.msk.bf16.gmra.mxu3 %vm263_vm1, %v1511_v45  ;;  %v1518_v44 = vld [vmem:[%s1823_s4 + $0xd0] sm:$0xf]  ;;  %v1667_v45 = vld [vmem:[%s1823_s4 + $0xd4] sm:$0xf0]  ;;  %v798_v22 = vshll.u32 %v1559_v10, 16  ;;  %v779_v26 = vsel %vm1854_vm4, %v774_v13, %v778_v14  ;;  %v1141_v35 = vshrl.u32 %v1636_v23, 16 }
  0x36   : > { %1550 = vmatmul.msk.bf16.gmra.mxu0 %vm263_vm1, %v1540_v47  ;;  %v1554_v47 = vld [vmem:[%s1823_s4 + $0xa4] sm:$0x1]  ;;  %v517_v60 = vpack.c.b16 %v513_v43, %v512_v42  ;;  %v1519_v61 = vor.u32 %v1667_v45, %v1518_v44  ;;  %v1125_v27 = vsel %vm1854_vm4, %v1120_v15, %v1124_v16  ;;  %v1144_v36 = vshll.u32 %v1636_v23, 16  ;;  %v1585_v41 = vld [vmem:[%s1823_s4 + $0x8] sm:$0xf] }
  0x37   : > { %v762_v1 = vshll.u32 %v1554_v47, 16  ;;  %v800_v33 = vrot.slane %v798_v22, 5  ;;  %v1155_v37 = vshrl.u32 %v1638_v24, 16  ;;  %v1158_v38 = vshll.u32 %v1638_v24, 16  ;;  %v1672_v42 = vld [vmem:[%s1823_s4 + $0xc] sm:$0xf0] }
  0x38   : > { %v867_v40 = vunpack.c.l.b16 %v779_v26  ;;  %v1226_v43 = vunpack.c.l.b16 %v1125_v27  ;;  %v1614_v45 = vld [vmem:[%s1823_s4 + $0x58] sm:$0xf]  ;;  %v1676_v47 = vld [vmem:[%s1823_s4 + $0x5c] sm:$0xf0]  ;;  %v790_v49 = vshll.u32 %v1558_v29, 16  ;;  %v804_v51 = vshll.u32 %v1560_v34, 16 }
  0x39   : > { %v764_v12 = vrot.slane %v762_v1, 5  ;;  %v1143_v52 = vrot.slane %v1141_v35, 4  ;;  %v1146_v53 = vrot.slane %v1144_v36, 5  ;;  %v1157_v54 = vrot.slane %v1155_v37, 4  ;;  %v1637_v57 = vld [vmem:[%s1823_s4 + $0x1c] sm:$0x1] }
  0x3a   : > { %v1160_v55 = vrot.slane %v1158_v38, 5  ;;  %v1639_v58 = vld [vmem:[%s1823_s4 + $0x24] sm:$0x1]  ;;  %v792_v63 = vrot.slane %v790_v49, 5  ;;  %v806_v1 = vrot.slane %v804_v51, 5  ;;  %v1150_v3 = vshll.u32 %v1637_v57, 16 }
  0x3b   : > { %v765_v25 = vsel %vm1854_vm4, %v760_v11, %v764_v12  ;;  %v1147_v2 = vor.u32 %v1146_v53, %v1143_v52  ;;  %v1164_v5 = vshll.u32 %v1639_v58, 16  ;;  %v1561_v6 = vld [vmem:[%s1823_s4 + $0xc0] sm:$0xf]  ;;  %v1642_v15 = vld [vmem:[%s1823_s4 + $0x30] sm:$0xf] }
  0x3c   : > { %v866_v39 = vunpack.c.l.b16 %v765_v25  ;;  %v1161_v4 = vor.u32 %v1160_v55, %v1157_v54  ;;  %v1152_v12 = vrot.slane %v1150_v3, 5  ;;  %v809_v16 = vshrl.u32 %v1561_v6, 16  ;;  %v1673_v29 = vld [vmem:[%s1823_s4 + $0x1c] sm:$0xf0]  ;;  %v1562_v35 = vld [vmem:[%s1823_s4 + $0xc4] sm:$0x1] }
  0x3d   : > { %v1148_v11 = vrot.slane %v1147_v2, 4  ;;  %v1166_v14 = vrot.slane %v1164_v5, 5  ;;  %v1183_v22 = vshrl.u32 %v1642_v15, 16  ;;  %v1186_v23 = vshll.u32 %v1642_v15, 16  ;;  %v1564_v36 = vld [vmem:[%s1823_s4 + $0xcc] sm:$0x1] }
  0x3e   : > { %v874_v56 = vpack.c.b16 %v867_v40, %v866_v39  ;;  %v1162_v13 = vrot.slane %v1161_v4, 4  ;;  %v1677_v39 = vld [vmem:[%s1823_s4 + $0x6c] sm:$0xf0]  ;;  %v818_v49 = vshll.u32 %v1562_v35, 16  ;;  %v832_v51 = vshll.u32 %v1564_v36, 16 }
  0x3f   : > { %v1153_v26 = vsel %vm1854_vm4, %v1148_v11, %v1152_v12  ;;  %v1565_v3 = vld [vmem:[%s1823_s4 + $0xd0] sm:$0xf]  ;;  %v1567_v4 = vld [vmem:[%s1823_s4 + $0xd8] sm:$0xf] }
  0x40   : > { %v1167_v27 = vsel %vm1854_vm4, %v1162_v13, %v1166_v14  ;;  %v1228_v40 = vunpack.c.l.b16 %v1153_v26  ;;  %v851_v11 = vshrl.u32 %v1567_v4, 16  ;;  %v854_v12 = vshll.u32 %v1567_v4, 16  ;;  %v1626_v4 = vld [vmem:[%s1823_s4 + $0x88] sm:$0xf] }
  0x44   : > { %1488 = vmatmul.msk.bf16.gmra.mxu1 %vm263_vm1, %v1481_v18  ;;  %v1138_v18 = vrot.slane %v1136_v7, 5  ;;  %v1563_v7 = vld [vmem:[%s1823_s4 + $0xc8] sm:$0xf] }
  0x45   : > { %1493 = vmatmul.msk.bf16.gmra.mxu2 %vm263_vm1, %v516_v19  ;;  %1522 = vmatmul.msk.bf16.gmra.mxu3 %vm263_vm1, %v1515_v20  ;;  %v781_v19 = vshrl.u32 %v1557_v9, 16  ;;  %v784_v20 = vshll.u32 %v1557_v9, 16 }
  0x46   : > { %1551 = vmatmul.msk.bf16.gmra.mxu0 %vm263_vm1, %v1544_v21  ;;  %v795_v21 = vshrl.u32 %v1559_v10, 16  ;;  %v1139_v28 = vsel %vm1854_vm4, %v1134_v17, %v1138_v18  ;;  %v1640_v10 = vld [vmem:[%s1823_s4 + $0x28] sm:$0xf]  ;;  %v812_v17 = vshll.u32 %v1561_v6, 16  ;;  %v823_v18 = vshrl.u32 %v1563_v7, 16 }
  0x47   : > { %v783_v30 = vrot.slane %v781_v19, 4  ;;  %v786_v31 = vrot.slane %v784_v20, 5  ;;  %v1227_v44 = vunpack.c.l.b16 %v1139_v28  ;;  %v826_v19 = vshll.u32 %v1563_v7, 16  ;;  %v1589_v28 = vld [vmem:[%s1823_s4 + $0x18] sm:$0xf] }
  0x48   : > { %v797_v32 = vrot.slane %v795_v21, 4  ;;  %v1169_v20 = vshrl.u32 %v1640_v10, 16  ;;  %v1172_v21 = vshll.u32 %v1640_v10, 16  ;;  %v1590_v52 = vor.u32 %v1673_v29, %v1589_v28  ;;  %v1644_v7 = vld [vmem:[%s1823_s4 + $0x38] sm:$0xf] }
  0x49   : > { %v787_v48 = vor.u32 %v786_v31, %v783_v30  ;;  %v1618_v30 = vld [vmem:[%s1823_s4 + $0x68] sm:$0xf]  ;;  %v811_v31 = vrot.slane %v809_v16, 4  ;;  %v828_v34 = vrot.slane %v826_v19, 5  ;;  %v840_v10 = vshll.u32 %v1565_v3, 16 }
  0x4a   : > { %v801_v50 = vor.u32 %v800_v33, %v797_v32  ;;  %v814_v32 = vrot.slane %v812_v17, 5  ;;  %v825_v33 = vrot.slane %v823_v18, 4  ;;  %v1171_v37 = vrot.slane %v1169_v20, 4 }
  0x4b   : > { %v788_v62 = vrot.slane %v787_v48, 4  ;;  %v1174_v38 = vrot.slane %v1172_v21, 5  ;;  %v1619_v53 = vor.u32 %v1677_v39, %v1618_v30  ;;  %v1197_v15 = vshrl.u32 %v1644_v7, 16  ;;  %v1593_v21 = vld [vmem:[%s1823_s4 + $0x28] sm:$0xf] }
  0x4c   : > { %v802_v0 = vrot.slane %v801_v50, 4  ;;  %v815_v48 = vor.u32 %v814_v32, %v811_v31  ;;  %v829_v50 = vor.u32 %v828_v34, %v825_v33  ;;  %v1200_v16 = vshll.u32 %v1644_v7, 16  ;;  %v1566_v31 = vld [vmem:[%s1823_s4 + $0xd4] sm:$0x1]  ;;  %v1568_v32 = vld [vmem:[%s1823_s4 + $0xdc] sm:$0x1] }
  0x4d   : > { %v1175_v54 = vor.u32 %v1174_v38, %v1171_v37  ;;  %v842_v26 = vrot.slane %v840_v10, 5  ;;  %v856_v28 = vrot.slane %v854_v12, 5  ;;  %v1199_v33 = vrot.slane %v1197_v15, 4 }
  0x4e   : > { %v807_v9 = vsel %vm1854_vm4, %v802_v0, %v806_v1  ;;  %v1202_v34 = vrot.slane %v1200_v16, 5 }
  0x4f   : > { %v869_v25 = vunpack.c.l.b16 %v807_v9  ;;  %v837_v9 = vshrl.u32 %v1565_v3, 16  ;;  %v1675_v3 = vld [vmem:[%s1823_s4 + $0x3c] sm:$0xf0] }
  0x54   : > { %1489 = vmatmul.msk.bf16.gmra.mxu1 %vm263_vm1, %v1485_v59  ;;  %v1586_v59 = vor.u32 %v1672_v42, %v1585_v41  ;;  %v1229_v41 = vunpack.c.l.b16 %v1167_v27  ;;  %v1641_v42 = vld [vmem:[%s1823_s4 + $0x2c] sm:$0x1]  ;;  %v853_v27 = vrot.slane %v851_v11, 4 }
  0x55   : > { %1494 = vmatmul.msk.bf16.gmra.mxu2 %vm263_vm1, %v517_v60  ;;  %1523 = vmatmul.msk.bf16.gmra.mxu3 %vm263_vm1, %v1519_v61  ;;  %v1615_v60 = vor.u32 %v1676_v47, %v1614_v45  ;;  %v1234_v61 = vpack.c.b16 %v1227_v44, %v1226_v43  ;;  %v1185_v43 = vrot.slane %v1183_v22, 4  ;;  %v1188_v44 = vrot.slane %v1186_v23, 5  ;;  %v1643_v47 = vld [vmem:[%s1823_s4 + $0x34] sm:$0x1]  ;;  %v1674_v22 = vld [vmem:[%s1823_s4 + $0x2c] sm:$0xf0] }
  0x56   : > { %1552 = vmatmul.msk.bf16.gmra.mxu0 %vm263_vm1, %v1548_v8  ;;  %v793_v8 = vsel %vm1854_vm4, %v788_v62, %v792_v63  ;;  %v1178_v55 = vshll.u32 %v1641_v42, 16  ;;  %v1192_v58 = vshll.u32 %v1643_v47, 16  ;;  %v834_v62 = vrot.slane %v832_v51, 5  ;;  %v1622_v23 = vld [vmem:[%s1823_s4 + $0x78] sm:$0xf] }
  0x57   : > { %v868_v24 = vunpack.c.l.b16 %v793_v8  ;;  %v1189_v57 = vor.u32 %v1188_v44, %v1185_v43  ;;  %v1176_v63 = vrot.slane %v1175_v54, 4  ;;  %v1646_v8 = vld [vmem:[%s1823_s4 + $0x40] sm:$0xf]  ;;  %v1594_v38 = vor.u32 %v1674_v22, %v1593_v21 }
  0x58   : > { %v1180_v0 = vrot.slane %v1178_v55, 5  ;;  %v1194_v2 = vrot.slane %v1192_v58, 5  ;;  %v1211_v17 = vshrl.u32 %v1646_v8, 16  ;;  %v1214_v18 = vshll.u32 %v1646_v8, 16 }
  0x59   : > { %v875_v45 = vpack.c.b16 %v869_v25, %v868_v24  ;;  %v1190_v1 = vrot.slane %v1189_v57, 4  ;;  %v1678_v24 = vld [vmem:[%s1823_s4 + $0x7c] sm:$0xf0]  ;;  %v839_v25 = vrot.slane %v837_v9, 4  ;;  %v846_v43 = vshll.u32 %v1566_v31, 16 }
  0x5a   : > { %v1181_v13 = vsel %vm1854_vm4, %v1176_v63, %v1180_v0  ;;  %v1213_v35 = vrot.slane %v1211_v17, 4  ;;  %v1216_v36 = vrot.slane %v1214_v18, 5  ;;  %v1623_v39 = vor.u32 %v1678_v24, %v1622_v23 }
  0x5b   : > { %v1195_v14 = vsel %vm1854_vm4, %v1190_v1, %v1194_v2  ;;  %v1230_v29 = vunpack.c.l.b16 %v1181_v13  ;;  %v843_v42 = vor.u32 %v842_v26, %v839_v25  ;;  %v857_v44 = vor.u32 %v856_v28, %v853_v27  ;;  %v1597_v2 = vld [vmem:[%s1823_s4 + $0x38] sm:$0xf] }
  0x5c   : > { %v1231_v30 = vunpack.c.l.b16 %v1195_v14  ;;  %v1598_v10 = vor.u32 %v1675_v3, %v1597_v2 }
  0x5d   : > { %v858_v54 = vrot.slane %v857_v44, 4 }
  0x5e   : > { %v1236_v47 = vpack.c.b16 %v1231_v30, %v1230_v29 }
  0x64   : > { %1570 = vmatmul.msk.bf16.vlgmr.msra.gmra.mxu1 %vm263_vm1, %v874_v56  ;;  %v1235_v56 = vpack.c.b16 %v1229_v41, %v1228_v40  ;;  %v1645_v40 = vld [vmem:[%s1823_s4 + $0x3c] sm:$0x1]  ;;  %v1647_v41 = vld [vmem:[%s1823_s4 + $0x44] sm:$0x1] }
  0x65   : > { %1599 = vmatmul.msk.bf16.vlgmr.msra.gmra.mxu2 %vm263_vm1, %v1586_v59  ;;  %1628 = vmatmul.msk.bf16.vlgmr.msra.gmra.mxu3 %vm263_vm1, %v1615_v60  ;;  %v816_v59 = vrot.slane %v815_v48, 4  ;;  %v820_v60 = vrot.slane %v818_v49, 5  ;;  %v1203_v48 = vor.u32 %v1202_v34, %v1199_v33  ;;  %v1206_v49 = vshll.u32 %v1645_v40, 16 }
  0x66   : > { %1649 = vmatmul.msk.bf16.vlgmr.msra.gmra.mxu0 %vm263_vm1, %v1234_v61  ;;  %v830_v61 = vrot.slane %v829_v50, 4  ;;  %v1217_v50 = vor.u32 %v1216_v36, %v1213_v35  ;;  %v1220_v51 = vshll.u32 %v1647_v41, 16 }
  0x67   : > { %v821_v5 = vsel %vm1854_vm4, %v816_v59, %v820_v60  ;;  %v1208_v57 = vrot.slane %v1206_v49, 5 }
  0x68   : > { %v835_v6 = vsel %vm1854_vm4, %v830_v61, %v834_v62  ;;  %v870_v19 = vunpack.c.l.b16 %v821_v5  ;;  %v1218_v58 = vrot.slane %v1217_v50, 4  ;;  %v1222_v59 = vrot.slane %v1220_v51, 5  ;;  %v1679_v5 = vld [vmem:[%s1823_s4 + $0x8c] sm:$0xf0] }
  0x69   : > { %v871_v20 = vunpack.c.l.b16 %v835_v6  ;;  %v1627_v11 = vor.u32 %v1679_v5, %v1626_v4 }
  0x6a   : > { %v1223_v63 = vsel %vm1854_vm4, %v1218_v58, %v1222_v59 }
  0x6b   : > { %v876_v37 = vpack.c.b16 %v871_v20, %v870_v19  ;;  %v1233_v7 = vunpack.c.l.b16 %v1223_v63 }
  0x74   : > { %1571 = vmatmul.msk.bf16.gmra.mxu1 %vm263_vm1, %v875_v45  ;;  %v860_v45 = vshll.u32 %v1568_v32, 16 }
  0x75   : > { %1600 = vmatmul.msk.bf16.gmra.mxu2 %vm263_vm1, %v1590_v52  ;;  %1629 = vmatmul.msk.bf16.gmra.mxu3 %vm263_vm1, %v1619_v53  ;;  %v844_v52 = vrot.slane %v843_v42, 4  ;;  %v848_v53 = vrot.slane %v846_v43, 5 }
  0x76   : > { %1650 = vmatmul.msk.bf16.gmra.mxu0 %vm263_vm1, %v1235_v56  ;;  %v862_v55 = vrot.slane %v860_v45, 5  ;;  %v1204_v56 = vrot.slane %v1203_v48, 4 }
  0x77   : > { %v849_v60 = vsel %vm1854_vm4, %v844_v52, %v848_v53 }
  0x78   : > { %v863_v61 = vsel %vm1854_vm4, %v858_v54, %v862_v55  ;;  %v1209_v62 = vsel %vm1854_vm4, %v1204_v56, %v1208_v57  ;;  %v872_v0 = vunpack.c.l.b16 %v849_v60 }
  0x79   : > { %v873_v1 = vunpack.c.l.b16 %v863_v61  ;;  %v1232_v6 = vunpack.c.l.b16 %v1209_v62 }
  0x7b   : > { %v877_v8 = vpack.c.b16 %v873_v1, %v872_v0  ;;  %v1237_v12 = vpack.c.b16 %v1233_v7, %v1232_v6 }
  0x84   : > { %1572 = vmatmul.msk.bf16.gmra.mxu1 %vm263_vm1, %v876_v37 }
  0x85   : > { %1601 = vmatmul.msk.bf16.gmra.mxu2 %vm263_vm1, %v1594_v38  ;;  %1630 = vmatmul.msk.bf16.gmra.mxu3 %vm263_vm1, %v1623_v39 }
  0x86   : > { %1651 = vmatmul.msk.bf16.gmra.mxu0 %vm263_vm1, %v1236_v47 }
  0x91   : > { %v294_v9 = vpop.f32.mrf.mxu1 }
  0x93   : > { %v289_v13 = vpop.f32.mrf.mxu0 }
  0x94   : > { %1573 = vmatmul.msk.bf16.gmra.mxu1 %vm263_vm1, %v877_v8 }
  0x95   : > { %1602 = vmatmul.msk.bf16.gmra.mxu2 %vm263_vm1, %v1598_v10  ;;  %1631 = vmatmul.msk.bf16.gmra.mxu3 %vm263_vm1, %v1627_v11 }
  0x96   : > { %1652 = vmatmul.msk.bf16.gmra.mxu0 %vm263_vm1, %v1237_v12 }
  0x98   : > { %v299_v46 = vpop.f32.mrf.mxu2  ;;  %v304_v14 = vpop.f32.mrf.mxu3 }
  0x99   : > { %v2022_v15 = vpop.f32.mrf.mxu1 }
  0x9b   : > { %v291_v16 = vpop.f32.mrf.mxu0 }
  0xa0   : > { %v2024_v17 = vpop.f32.mrf.mxu2  ;;  %v2026_v18 = vpop.f32.mrf.mxu3 }
  0xa1   : > { %v353_v19 = vpop.f32.mrf.mxu1 }
  0xa2   : > { %v354_v20 = vadd.f32 %v353_v19, %v289_v13 }
  0xa3   : > { %v708_v21 = vpop.f32.mrf.mxu0 }
  0xa8   : > { %v542_v22 = vpop.f32.mrf.mxu2  ;;  %v625_v23 = vpop.f32.mrf.mxu3 }
  0xa9   : > { %v562_v24 = vadd.f32 %v542_v22, %v354_v20  ;;  %v355_v25 = vpop.f32.mrf.mxu1 }
  0xaa   : > { %v356_v5 = vadd.f32 %v355_v25, %v291_v16  ;;  %v2053_v16 = vld [vmem:[%s2098_s2] ss:$0 sm:$0xff] }
  0xab   : > { %v645_v26 = vadd.f32 %v625_v23, %v562_v24  ;;  %v710_v27 = vpop.f32.mrf.mxu0 }
  0xad   : > { %v728_v28 = vadd.f32 %v708_v21, %v645_v26 }
  0xb0   : > { %v544_v29 = vpop.f32.mrf.mxu2  ;;  %v627_v30 = vpop.f32.mrf.mxu3 }
  0xb1   : > { %v358_v31 = vpop.f32.mrf.mxu1  ;;  %v563_v7 = vadd.f32 %v544_v29, %v356_v5 }
  0xb2   : > { %v359_v32 = vadd.f32 %v358_v31, %v294_v9 }
  0xb3   : > { %v713_v33 = vpop.f32.mrf.mxu0  ;;  %v646_v11 = vadd.f32 %v627_v30, %v563_v7 }
  0xb5   : > { %v729_v19 = vadd.f32 %v710_v27, %v646_v11 }
  0xb8   : > { %v547_v34 = vpop.f32.mrf.mxu2  ;;  %v630_v35 = vpop.f32.mrf.mxu3 }
  0xb9   : > { %v564_v36 = vadd.f32 %v547_v34, %v359_v32  ;;  %v360_v37 = vpop.f32.mrf.mxu1 }
  0xba   : > { %v361_v26 = vadd.f32 %v360_v37, %v2022_v15 }
  0xbb   : > { %v647_v38 = vadd.f32 %v630_v35, %v564_v36  ;;  %v2028_v39 = vpop.f32.mrf.mxu0 }
  0xbd   : > { %v730_v40 = vadd.f32 %v713_v33, %v647_v38 }
  0xc0   : > { %v549_v41 = vpop.f32.mrf.mxu2  ;;  %v632_v42 = vpop.f32.mrf.mxu3 }
  0xc1   : > { %v363_v43 = vpop.f32.mrf.mxu1  ;;  %v565_v30 = vadd.f32 %v549_v41, %v361_v26 }
  0xc2   : > { %v364_v44 = vadd.f32 %v363_v43, %v299_v46 }
  0xc3   : > { %v718_v45 = vpop.f32.mrf.mxu0  ;;  %v648_v36 = vadd.f32 %v632_v42, %v565_v30 }
  0xc8   : > { %v552_v47 = vpop.f32.mrf.mxu2  ;;  %v635_v48 = vpop.f32.mrf.mxu3 }
  0xc9   : > { %v566_v49 = vadd.f32 %v552_v47, %v364_v44  ;;  %v2030_v50 = vpop.f32.mrf.mxu1  ;;  %v731_v47 = vadd.f32 %v2028_v39, %v648_v36 }
  0xcb   : > { %v649_v51 = vadd.f32 %v635_v48, %v566_v49  ;;  %v2032_v52 = vpop.f32.mrf.mxu0 }
  0xcd   : > { %v2034_v53 = vadd.f32 %v718_v45, %v649_v51 }
  0xd0   : > { %v2036_v54 = vpop.f32.mrf.mxu2  ;;  %v2038_v55 = vpop.f32.mrf.mxu3 }
  0xd1   : > { %v368_v56 = vpop.f32.mrf.mxu1 }
  0xd2   : > { %v369_v57 = vadd.f32 %v368_v56, %v304_v14 }
  0xd3   : > { %v723_v58 = vpop.f32.mrf.mxu0 }
  0xd8   : > { %v557_v59 = vpop.f32.mrf.mxu2  ;;  %v640_v60 = vpop.f32.mrf.mxu3 }
  0xd9   : > { %v568_v61 = vadd.f32 %v557_v59, %v369_v57  ;;  %v2040_v62 = vpop.f32.mrf.mxu1  ;;  %v366_v57 = vadd.f32 %v2030_v50, %v2024_v17 }
  0xdb   : > { %v651_v63 = vadd.f32 %v640_v60, %v568_v61  ;;  %v2042_v0 = vpop.f32.mrf.mxu0  ;;  %v567_v59 = vadd.f32 %v2036_v54, %v366_v57 }
  0xdd   : > { %v2044_v1 = vadd.f32 %v723_v58, %v651_v63  ;;  %v650_v7 = vadd.f32 %v2038_v55, %v567_v59 }
  0xdf   : > { %v733_v54 = vadd.f32 %v2032_v52, %v650_v7 }
  0xe0   : > { %v2046_v2 = vpop.f32.mrf.mxu2  ;;  %v2048_v3 = vpop.f32.mrf.mxu3 }
  0xe1   : > { %v902_v4 = vpop.f32.mrf.mxu1 }
  0xe2   : > { %v922_v8 = vadd.f32 %v902_v4, %v728_v28 }
  0xe3   : > { %v1262_v6 = vpop.f32.mrf.mxu0 }
  0xe8   : > { %v985_v9 = vpop.f32.mrf.mxu2  ;;  %v1068_v10 = vpop.f32.mrf.mxu3 }
  0xe9   : > { %v1005_v12 = vadd.f32 %v985_v9, %v922_v8  ;;  %v904_v13 = vpop.f32.mrf.mxu1 }
  0xea   : > { %v923_v20 = vadd.f32 %v904_v13, %v729_v19 }
  0xeb   : > { %v1264_v46 = vpop.f32.mrf.mxu0  ;;  %v1088_v14 = vadd.f32 %v1068_v10, %v1005_v12 }
  0xed   : > { %v1282_v23 = vadd.f32 %v1262_v6, %v1088_v14 }
  0xef   : > { %v1294_v31 = vadd.f32 %v2053_v16, %v1282_v23 }
  0xf0   : > { %v987_v21 = vpop.f32.mrf.mxu2  ;;  %v1070_v22 = vpop.f32.mrf.mxu3 }
  0xf1   : > { %v1006_v24 = vadd.f32 %v987_v21, %v923_v20  ;;  %v907_v25 = vpop.f32.mrf.mxu1  ;;  %v1302_v38 = vmax.f32 %v1294_v31, 0.0  ;;  %v371_v21 = vadd.f32 %v2040_v62, %v2026_v18 }
  0xf2   : > { %v924_v33 = vadd.f32 %v907_v25, %v730_v40 }
  0xf3   : > { %v1089_v28 = vadd.f32 %v1070_v22, %v1006_v24  ;;  %v1267_v29 = vpop.f32.mrf.mxu0  ;;  %v569_v22 = vadd.f32 %v2046_v2, %v371_v21 }
  0xf5   : > { %v1283_v32 = vadd.f32 %v1264_v46, %v1089_v28 }
  0xf7   : > { %v1295_v27 = vadd.f32 %v2053_v16, %v1283_v32 }
  0xf8   : > { %v990_v34 = vpop.f32.mrf.mxu2  ;;  %v1073_v35 = vpop.f32.mrf.mxu3 }
  0xf9   : > { %v1303_v43 = vmax.f32 %v1295_v27, 0.0  ;;  %v1007_v44 = vadd.f32 %v990_v34, %v924_v33  ;;  %v909_v45 = vpop.f32.mrf.mxu1 }
  0xfa   : > { %v925_v40 = vadd.f32 %v909_v45, %v731_v47 }
  0xfb   : > { %v1683_v15 = vpack.c.bf16 %v1303_v43, %v1302_v38  ;;  %v1269_v37 = vpop.f32.mrf.mxu0  ;;  %v1090_v41 = vadd.f32 %v1073_v35, %v1007_v44 }
  0xfd   : > { %1684 = vst [vmem:[%s2062_s20] sm:$0xff] %v1683_v15   ;;  %v1284_v42 = vadd.f32 %v1267_v29, %v1090_v41  ;;  %v652_v29 = vadd.f32 %v2048_v3, %v569_v22 }
  0xff   : > { %v1296_v60 = vadd.f32 %v2053_v16, %v1284_v42  ;;  %v735_v33 = vadd.f32 %v2042_v0, %v652_v29 }
 0x100   : > { %v992_v48 = vpop.f32.mrf.mxu2  ;;  %v1075_v49 = vpop.f32.mrf.mxu3 }
 0x101   : > { %v1008_v51 = vadd.f32 %v992_v48, %v925_v40  ;;  %v912_v56 = vpop.f32.mrf.mxu1  ;;  %v1304_v8 = vmax.f32 %v1296_v60, 0.0 }
 0x102   : > { %v926_v39 = vadd.f32 %v912_v56, %v2034_v53 }
 0x103   : > { %v1091_v58 = vadd.f32 %v1075_v49, %v1008_v51  ;;  %v1272_v63 = vpop.f32.mrf.mxu0 }
 0x105   : > { %v1285_v61 = vadd.f32 %v1269_v37, %v1091_v58 }
 0x107   : > { %v1297_v4 = vadd.f32 %v2053_v16, %v1285_v61 }
 0x108   : > { %v995_v5 = vpop.f32.mrf.mxu2  ;;  %v1078_v6 = vpop.f32.mrf.mxu3 }
 0x109   : > { %v1305_v9 = vmax.f32 %v1297_v4, 0.0  ;;  %v1009_v10 = vadd.f32 %v995_v5, %v926_v39  ;;  %v914_v17 = vpop.f32.mrf.mxu1 }
 0x10a   : > { %v927_v12 = vadd.f32 %v914_v17, %v733_v54 }
 0x10b   : > { %v1688_v50 = vpack.c.bf16 %v1305_v9, %v1304_v8  ;;  %v1092_v11 = vadd.f32 %v1078_v6, %v1009_v10  ;;  %v1274_v13 = vpop.f32.mrf.mxu0 }
 0x10d   : > { %1700 = vst [vmem:[%s2062_s20 + $0x8] sm:$0xff] %v1688_v50   ;;  %v1286_v19 = vadd.f32 %v1272_v63, %v1092_v11 }
 0x10f   : > { %v1298_v23 = vadd.f32 %v2053_v16, %v1286_v19 }
 0x110   : > { %v997_v46 = vpop.f32.mrf.mxu2  ;;  %v1080_v14 = vpop.f32.mrf.mxu3 }
 0x111   : > { %v1010_v20 = vadd.f32 %v997_v46, %v927_v12  ;;  %v917_v53 = vpop.f32.mrf.mxu1  ;;  %v1306_v30 = vmax.f32 %v1298_v23, 0.0 }
 0x112   : > { %v928_v52 = vadd.f32 %v917_v53, %v2044_v1 }
 0x113   : > { %v1093_v55 = vadd.f32 %v1080_v14, %v1010_v20  ;;  %v1277_v27 = vpop.f32.mrf.mxu0 }
 0x115   : > { %v1287_v24 = vadd.f32 %v1274_v13, %v1093_v55 }
 0x117   : > { %v1299_v25 = vadd.f32 %v2053_v16, %v1287_v24 }
 0x118   : > { %v1000_v26 = vpop.f32.mrf.mxu2  ;;  %v1083_v28 = vpop.f32.mrf.mxu3 }
 0x119   : > { %v1307_v31 = vmax.f32 %v1299_v25, 0.0  ;;  %v1011_v32 = vadd.f32 %v1000_v26, %v928_v52  ;;  %v919_v62 = vpop.f32.mrf.mxu1 }
 0x11a   : > { %v929_v34 = vadd.f32 %v919_v62, %v735_v33 }
 0x11b   : > { %v1693_v18 = vpack.c.bf16 %v1307_v31, %v1306_v30  ;;  %v1094_v2 = vadd.f32 %v1083_v28, %v1011_v32  ;;  %v1279_v44 = vpop.f32.mrf.mxu0 }
 0x11d   : > { %1701 = vst [vmem:[%s2062_s20 + $0x10] sm:$0xff] %v1693_v18   ;;  %v1288_v36 = vadd.f32 %v1277_v27, %v1094_v2 }
 0x11f   : > { %v1300_v3 = vadd.f32 %v2053_v16, %v1288_v36 }
 0x120   : > { %v1002_v35 = vpop.f32.mrf.mxu2  ;;  %v1085_v1 = vpop.f32.mrf.mxu3 }
 0x121   : > { %v1012_v38 = vadd.f32 %v1002_v35, %v929_v34  ;;  %v1308_v37 = vmax.f32 %v1300_v3, 0.0 }
 0x123   : > { %v1095_v43 = vadd.f32 %v1085_v1, %v1012_v38 }
 0x125   : > { %v1289_v45 = vadd.f32 %v1279_v44, %v1095_v43 }
 0x127   : > { %v1301_v15 = vadd.f32 %v2053_v16, %v1289_v45 }
 0x129   : > { %v1309_v41 = vmax.f32 %v1301_v15, 0.0 }
 0x12b   : > { %v1698_v47 = vpack.c.bf16 %v1309_v41, %v1308_v37 }
 0x12d   : > { %1702 = vst [vmem:[%s2062_s20 + $0x18] sm:$0xff] %v1698_v47  }
 0x12e PF: > { %s13_s14 = sadd.s32 1, %s1754_s14   ;;  %s2102_s12 = smov %s1750_s13 }
 0x12f   : > { %p10_p5 = scmp.ge.s32.totalorder %s13_s14, 4   ;;  %s2103_s13 = smov %s2105_s15 }
 0x131   :  { %12 = sbr.rel (!%p10_p5) target bundleno = 2 (0x2), region = 81 }

// kernel: vanilla_block_forward.3
= control target key start
LH: loop header
LB: loop body
LE: loop exit
PB: predicated region body
PF: predicated region fallthrough
CT: control target
= control target key end

     0   :  { %s1813_s12 = smov 0   ;;  %s1815_s13 = smov 0   ;;  %s2273_s0 = inlined_call_operand.vmem [shape: bf16[2,10,10,8], index: 0, kind: input, shape index: {}]   ;;  %s2274_s1 = inlined_call_operand.vmem [shape: bf16[9,8,128], index: 1, kind: input, shape index: {}]   ;;  %s2275_s2 = inlined_call_operand.vmem [shape: f32[1,128], index: 2, kind: input, shape index: {}]   ;;  %s2276_s3 = inlined_call_operand.vmem [shape: f32[2,64,128], index: 3, kind: output, shape index: {}]  }
   0x1   :  { %s1817_s14 = smov 0  }
   0x2 LB: > { %s25_s15 = sadd.s32 1, %s1787_s13  ;;  %p1541_p0 = scmp.ge.s32.totalorder %s1791_s14, 1  ;;  %s1791_s14 = sphi %s1817_s14, %s13_s14   ;;  %s1787_s13 = sphi %s1815_s13, %s2282_s13   ;;  %s1783_s12 = sphi %s1813_s12, %s2281_s12  }
   0x3   : > { %p27_p1 = scmp.ge.s32.totalorder %s25_s15, 2  ;;  %p168_p2 = scmp.lt.s32.totalorder %s1791_s14, 3 }
   0x5   : > { %s2284_s15 = smov (%p27_p1, %s25_s15), 0  ;;  %p169_p3 = pnand %p1541_p0, %p168_p2 }
   0x6   : > { %p202_p4 = scmp.lt.s32.totalorder (!%p169_p3), %s1783_s12, 1 }
   0x7   : > { %172 = sbr.rel (%p169_p3) target bundleno = 318 (0x13e), region = 32 }
   0xc   : > { %v1545_v0 = vld [vmem:[%s2274_s1 + $0x4] sm:$0xf]  ;;  %vm382_vm0 = vcmask 1043456   ;;  %v1578_v2 = vld [vmem:[%s2274_s1 + $0x8] sm:$0xf]  ;;  %s2286_s12 = smov (!%p202_p4, %s1783_s12), 1 }
   0xd   : > { %v384_v1 = vsel %vm382_vm0, %v1545_v0, 0  ;;  %v565_v3 = vsel %vm382_vm0, %v1578_v2, 0  ;;  %s1743_s20 = smul.u32 80, %s2286_s12  ;;  %v1591_v4 = vld [vmem:[%s2274_s1 + $0xc] sm:$0xf]  ;;  %vm369_vm3 = vcmask 64512  }
   0xe   : > { %1740 = vmatpush.bf16.msra.mxu1 %v384_v1  ;;  %1741 = vmatpush.bf16.msra.mxu2 %v384_v1  ;;  %v231_v5 = vld [vmem:[%s2274_s1] sm:$0xf]  ;;  %v648_v6 = vsel %vm382_vm0, %v1591_v4, 0  ;;  %v1628_v8 = vld [vmem:[%s2274_s1 + $0x10] sm:$0xf]  ;;  %vm503_vm5 = vcmask 1042432  }
   0xf   : > { %1742 = vmatpush.bf16.msra.mxu3 %v384_v1  ;;  %393 = vmatpush.bf16.msra.mxu0 %v384_v1  ;;  %v448_v7 = vsel %vm382_vm0, %v231_v5, 0  ;;  %s1856_s29 = scalar_lea.vmem %s2273_s0, %s1743_s20  ;;  %vm240_vm1 = vsmask.f32 3328  ;;  %vm241_vm2 = vsmask.f32 7440  ;;  %v842_v9 = vsel %vm382_vm0, %v1628_v8, 0 }
  0x10   : > { %v225_v10 = vld [vmem:[%s1856_s29 + $0x10] sm:$0xf]  ;;  %v226_v11 = vld [vmem:[%s1856_s29 + $0x18] sm:$0xf]  ;;  %v1862_v12 = vld [vmem:[%s1856_s29 + $0x14] sm:$0x1] }
  0x11   : > { %v1865_v13 = vld [vmem:[%s1856_s29 + $0x1c] sm:$0x1]  ;;  %v272_v14 = vshrl.u32 %v225_v10, 16  ;;  %v275_v15 = vshll.u32 %v225_v10, 16  ;;  %v281_v16 = vshll.u32 %v1862_v12, 16  ;;  %v286_v17 = vshrl.u32 %v226_v11, 16  ;;  %vm1881_vm4 = vmor %vm240_vm1, %vm241_vm2 }
  0x12   : > { %574 = vmatpush.bf16.msrb.mxu2 %v565_v3  ;;  %457 = vmatpush.bf16.msrb.mxu1 %v448_v7  ;;  %v289_v18 = vshll.u32 %v226_v11, 16  ;;  %v295_v19 = vshll.u32 %v1865_v13, 16  ;;  %v227_v20 = vld [vmem:[%s1856_s29 + $0x20] sm:$0xf]  ;;  %v228_v21 = vld [vmem:[%s1856_s29 + $0x28] sm:$0xf] }
  0x13   : > { %657 = vmatpush.bf16.msrb.mxu3 %v648_v6  ;;  %851 = vmatpush.bf16.msrb.mxu0 %v842_v9  ;;  %v274_v22 = vrot.slane %v272_v14, 4  ;;  %v277_v23 = vrot.slane %v275_v15, 5  ;;  %v283_v24 = vrot.slane %v281_v16, 5  ;;  %v288_v25 = vrot.slane %v286_v17, 4  ;;  %v1872_v26 = vld [vmem:[%s1856_s29 + $0x24] sm:$0x1] }
  0x14   : > { %v291_v27 = vrot.slane %v289_v18, 5  ;;  %v297_v28 = vrot.slane %v295_v19, 5  ;;  %v1875_v29 = vld [vmem:[%s1856_s29 + $0x2c] sm:$0x1]  ;;  %v300_v30 = vshrl.u32 %v227_v20, 16  ;;  %v303_v31 = vshll.u32 %v227_v20, 16 }
  0x15   : > { %v278_v32 = vor.u32 %v277_v23, %v274_v22  ;;  %v309_v33 = vshll.u32 %v1872_v26, 16  ;;  %v314_v34 = vshrl.u32 %v228_v21, 16  ;;  %v317_v35 = vshll.u32 %v228_v21, 16  ;;  %v229_v36 = vld [vmem:[%s1856_s29 + $0x30] sm:$0xf]  ;;  %s1727_s17 = sshll.u32 %s2286_s12, 6 }
  0x16   : > { %v292_v38 = vor.u32 %v291_v27, %v288_v25  ;;  %v302_v39 = vrot.slane %v300_v30, 4  ;;  %v305_v40 = vrot.slane %v303_v31, 5  ;;  %v323_v41 = vshll.u32 %v1875_v29, 16  ;;  %v1887_v46 = vld [vmem:[%s1856_s29 + $0x34] sm:$0x1]  ;;  %s2226_s20 = scalar_lea.vmem %s2276_s3, %s1727_s17 }
  0x17   : > { %v279_v42 = vrot.slane %v278_v32, 4  ;;  %v311_v43 = vrot.slane %v309_v33, 5  ;;  %v316_v44 = vrot.slane %v314_v34, 4  ;;  %v319_v45 = vrot.slane %v317_v35, 5  ;;  %v230_v53 = vld [vmem:[%s1856_s29 + $0x38] sm:$0xf] }
  0x18   : > { %v293_v47 = vrot.slane %v292_v38, 4  ;;  %v306_v48 = vor.u32 %v305_v40, %v302_v39  ;;  %v325_v49 = vrot.slane %v323_v41, 5  ;;  %v328_v50 = vshrl.u32 %v229_v36, 16  ;;  %v1893_v54 = vld [vmem:[%s1856_s29 + $0x3c] sm:$0x1] }
  0x19   : > { %vm504_vm6 = vcmask 1046532   ;;  %v284_v51 = vsel %vm1881_vm4, %v279_v42, %v283_v24  ;;  %v320_v52 = vor.u32 %v319_v45, %v316_v44  ;;  %v331_v55 = vshll.u32 %v229_v36, 16  ;;  %v223_v1 = vld [vmem:[%s1856_s29] sm:$0xf]  ;;  %v232_v6 = vld [vmem:[%s1856_s29 + $0x4] sm:$0x1] }
  0x1a   : > { %v337_v56 = vshll.u32 %v1887_v46, 16  ;;  %v298_v57 = vsel %vm1881_vm4, %v293_v47, %v297_v28  ;;  %v359_v58 = vunpack.c.l.b16 %v284_v51  ;;  %v307_v59 = vrot.slane %v306_v48, 4  ;;  %v224_v11 = vld [vmem:[%s1856_s29 + $0x8] sm:$0xf]  ;;  %v233_v24 = vld [vmem:[%s1856_s29 + $0xc] sm:$0x1]  ;;  %vm1915_vm7 = vmor %vm503_vm5, %vm504_vm6 }
  0x1b   : > { %v330_v60 = vrot.slane %v328_v50, 4  ;;  %v360_v61 = vunpack.c.l.b16 %v298_v57  ;;  %v321_v62 = vrot.slane %v320_v52, 4  ;;  %v333_v63 = vrot.slane %v331_v55, 5  ;;  %v479_v33 = vld [vmem:[%s1856_s29] sm:$0xe] }
  0x1c   : > { %v339_v0 = vrot.slane %v337_v56, 5  ;;  %v312_v2 = vsel %vm1881_vm4, %v307_v59, %v311_v43  ;;  %v342_v3 = vshrl.u32 %v230_v53, 16  ;;  %v345_v4 = vshll.u32 %v230_v53, 16  ;;  %v480_v39 = vld [vmem:[%s1856_s29 + $0x8] sm:$0xe] }
  0x1d   : > { %v351_v5 = vshll.u32 %v1893_v54, 16  ;;  %v366_v7 = vpack.c.b16 %v360_v61, %v359_v58  ;;  %v326_v8 = vsel %vm1881_vm4, %v321_v62, %v325_v49  ;;  %v361_v9 = vunpack.c.l.b16 %v312_v2  ;;  %v1662_v45 = vld [vmem:[%s2274_s1 + $0x18] sm:$0xf]  ;;  %v1612_v55 = vld [vmem:[%s1856_s29 + $0x8] sm:$0xf] }
  0x1e   : > { %v334_v10 = vor.u32 %v333_v63, %v330_v60  ;;  %v362_v14 = vunpack.c.l.b16 %v326_v8  ;;  %v344_v15 = vrot.slane %v342_v3, 4  ;;  %v347_v16 = vrot.slane %v345_v4, 5  ;;  %v1614_v59 = vld [vmem:[%s1856_s29 + $0x10] sm:$0xf]  ;;  %v1934_v63 = vld [vmem:[%s1856_s29 + $0xc] sm:$0x1] }
  0x1f   : > { %v353_v17 = vrot.slane %v351_v5, 5  ;;  %1547 = vmatmul.msk.bf16.vlgmr.msra.gmra.mxu1 %vm369_vm3, %v366_v7  ;;  %v244_v19 = vshrl.u32 %v223_v1, 16  ;;  %v247_v20 = vshll.u32 %v223_v1, 16  ;;  %v253_v21 = vshll.u32 %v232_v6, 16  ;;  %v1552_v3 = vld [vmem:[%s1856_s29] sm:$0xf] }
  0x20   : > { %v335_v18 = vrot.slane %v334_v10, 4  ;;  %v367_v22 = vpack.c.b16 %v362_v14, %v361_v9  ;;  %v348_v23 = vor.u32 %v347_v16, %v344_v15  ;;  %v258_v25 = vshrl.u32 %v224_v11, 16  ;;  %v1728_v4 = vld [vmem:[%s1856_s29 + $0x4] sm:$0xf0]  ;;  %v1649_v14 = vld [vmem:[%s2274_s1 + $0x14] sm:$0xf] }
  0x21   : > { %v261_v27 = vshll.u32 %v224_v11, 16  ;;  %v246_v30 = vrot.slane %v244_v19, 4  ;;  %v249_v31 = vrot.slane %v247_v20, 5  ;;  %v255_v32 = vrot.slane %v253_v21, 5  ;;  %v1699_v11 = vld [vmem:[%s2274_s1 + $0x1c] sm:$0xf] }
  0x22   : > { %v340_v28 = vsel %vm1881_vm4, %v335_v18, %v339_v0  ;;  %1548 = vmatmul.msk.bf16.vlgmr.msra.gmra.mxu2 %vm369_vm3, %v367_v22  ;;  %v349_v34 = vrot.slane %v348_v23, 4  ;;  %v260_v36 = vrot.slane %v258_v25, 4  ;;  %v267_v41 = vshll.u32 %v233_v24, 16  ;;  %v1937_v0 = vld [vmem:[%s1856_s29 + $0x14] sm:$0x1] }
  0x23   : > { %v363_v35 = vunpack.c.l.b16 %v340_v28  ;;  %v263_v38 = vrot.slane %v261_v27, 5  ;;  %v250_v40 = vor.u32 %v249_v31, %v246_v30  ;;  %v508_v42 = vrot.slane %v232_v6, 5  ;;  %v1720_v19 = vld [vmem:[%s2274_s1 + $0x20] sm:$0xf] }
  0x24   : > { %v512_v43 = vrot.slane %v233_v24, 5  ;;  %v354_v47 = vsel %vm1881_vm4, %v349_v34, %v353_v17  ;;  %v1570_v49 = vrot.slane %v479_v33, 9  ;;  %v269_v52 = vrot.slane %v267_v41, 5  ;;  %v1618_v41 = vld [vmem:[%s1856_s29 + $0x20] sm:$0xf] }
  0x25   : > { %v264_v48 = vor.u32 %v263_v38, %v260_v36  ;;  %v364_v50 = vunpack.c.l.b16 %v354_v47  ;;  %v251_v51 = vrot.slane %v250_v40, 4  ;;  %v1571_v53 = vrot.slane %v480_v39, 9  ;;  %v1616_v38 = vld [vmem:[%s1856_s29 + $0x18] sm:$0xf]  ;;  %v1732_v47 = vld [vmem:[%s1856_s29 + $0xc] sm:$0xf0] }
  0x26   : > { %v509_v57 = vsel %vm1915_vm7, %v1570_v49, %v508_v42  ;;  %v1047_v58 = vsel %vm382_vm0, %v1662_v45, 0  ;;  %v704_v6 = vshrl.u32 %v1612_v55, 16  ;;  %v707_v9 = vshll.u32 %v1612_v55, 16  ;;  %v482_v40 = vld [vmem:[%s1856_s29 + $0x18] sm:$0xe] }
  0x27   : > { %v265_v56 = vrot.slane %v264_v48, 4  ;;  %v368_v60 = vpack.c.b16 %v364_v50, %v363_v35  ;;  %v256_v61 = vsel %vm1881_vm4, %v251_v51, %v255_v32  ;;  %v513_v62 = vsel %vm1915_vm7, %v1571_v53, %v512_v43  ;;  %1056 = vmatpush.bf16.msra.mxu2 %v1047_v58  ;;  %v481_v35 = vld [vmem:[%s1856_s29 + $0x10] sm:$0xe]  ;;  %v1594_v45 = vld [vmem:[%s1856_s29 + $0x8] sm:$0xf] }
  0x28   : > { %v357_v2 = vunpack.c.l.b16 %v256_v61  ;;  %v540_v5 = vunpack.c.l.b16 %v509_v57  ;;  %v541_v8 = vunpack.c.l.b16 %v513_v62  ;;  %v718_v10 = vshrl.u32 %v1614_v59, 16 }
  0x29   : > { %v270_v1 = vsel %vm1881_vm4, %v265_v56, %v269_v52  ;;  %1549 = vmatmul.msk.bf16.vlgmr.msra.gmra.mxu3 %vm369_vm3, %v368_v60  ;;  %v706_v15 = vrot.slane %v704_v6, 4  ;;  %v713_v16 = vshll.u32 %v1934_v63, 16  ;;  %v721_v17 = vshll.u32 %v1614_v59, 16  ;;  %v1976_v60 = vld [vmem:[%s1856_s29 + $0x1c] sm:$0x1] }
  0x2a   : > { %v358_v7 = vunpack.c.l.b16 %v270_v1  ;;  %v727_v18 = vshll.u32 %v1937_v0, 16  ;;  %v1553_v21 = vor.u32 %v1728_v4, %v1552_v3  ;;  %v709_v22 = vrot.slane %v707_v9, 5  ;;  %v1981_v4 = vld [vmem:[%s1856_s29 + $0x24] sm:$0x1] }
  0x2b   : > { %v720_v23 = vrot.slane %v718_v10, 4  ;;  %v723_v24 = vrot.slane %v721_v17, 5  ;;  %v1241_v27 = vsel %vm382_vm0, %v1699_v11, 0  ;;  %v964_v28 = vsel %vm382_vm0, %v1649_v14, 0  ;;  %v1620_v17 = vld [vmem:[%s1856_s29 + $0x28] sm:$0xf] }
  0x2c   : > { %v365_v20 = vpack.c.b16 %v358_v7, %v357_v2  ;;  %v710_v25 = vor.u32 %v709_v22, %v706_v15  ;;  %v1363_v30 = vsel %vm382_vm0, %v1720_v19, 0  ;;  %v548_v31 = vpack.c.b16 %v541_v8, %v540_v5  ;;  %1250 = vmatpush.bf16.msra.mxu3 %v1241_v27  ;;  %973 = vmatpush.bf16.msra.mxu1 %v964_v28  ;;  %v1729_v5 = vld [vmem:[%s1856_s29 + $0x14] sm:$0xf0]  ;;  %v1622_v22 = vld [vmem:[%s1856_s29 + $0x30] sm:$0xf] }
  0x2d   : > { %v715_v32 = vrot.slane %v713_v16, 5  ;;  %v724_v33 = vor.u32 %v723_v24, %v720_v23  ;;  %v729_v34 = vrot.slane %v727_v18, 5  ;;  %v1572_v42 = vrot.slane %v481_v35, 9  ;;  %v483_v23 = vld [vmem:[%s1856_s29 + $0x20] sm:$0xe] }
  0x2e   : > { %1546 = vmatmul.msk.bf16.vlgmr.msra.gmra.mxu0 %vm369_vm3, %v365_v20  ;;  %v711_v36 = vrot.slane %v710_v25, 4  ;;  %v516_v43 = vrot.slane %v1862_v12, 5  ;;  %v732_v50 = vshrl.u32 %v1616_v38, 16  ;;  %v735_v51 = vshll.u32 %v1616_v38, 16  ;;  %v484_v24 = vld [vmem:[%s1856_s29 + $0x28] sm:$0xe] }
  0x2f   : > { %1566 = vmatmul.msk.bf16.vlgmr.msrb.gmra.mxu1 %vm369_vm3, %v1553_v21  ;;  %1372 = vmatpush.bf16.msra.mxu0 %v1363_v30  ;;  %v725_v39 = vrot.slane %v724_v33, 4  ;;  %v1573_v52 = vrot.slane %v482_v40, 9  ;;  %v520_v53 = vrot.slane %v1865_v13, 5  ;;  %v746_v12 = vshrl.u32 %v1618_v41, 16  ;;  %v1556_v13 = vld [vmem:[%s1856_s29 + $0x10] sm:$0xf] }
  0x30   : > { %v716_v48 = vsel %vm1881_vm4, %v711_v36, %v715_v32  ;;  %v749_v55 = vshll.u32 %v1618_v41, 16  ;;  %v1595_v56 = vor.u32 %v1732_v47, %v1594_v45  ;;  %v517_v59 = vsel %vm1915_vm7, %v1572_v42, %v516_v43  ;;  %v1598_v28 = vld [vmem:[%s1856_s29 + $0x18] sm:$0xf]  ;;  %v1733_v30 = vld [vmem:[%s1856_s29 + $0x1c] sm:$0xf0] }
  0x31   : > { %v730_v49 = vsel %vm1881_vm4, %v725_v39, %v729_v34  ;;  %v817_v57 = vunpack.c.l.b16 %v716_v48  ;;  %v734_v61 = vrot.slane %v732_v50, 4  ;;  %v737_v62 = vrot.slane %v735_v51, 5  ;;  %v2004_v47 = vld [vmem:[%s1856_s29 + $0x2c] sm:$0x1] }
  0x32   : > { %1579 = vmatmul.msk.bf16.vlgmr.msrb.gmra.mxu2 %vm369_vm3, %v548_v31  ;;  %v818_v58 = vunpack.c.l.b16 %v730_v49  ;;  %v748_v1 = vrot.slane %v746_v12, 4  ;;  %v751_v2 = vrot.slane %v749_v55, 5  ;;  %v521_v3 = vsel %vm1915_vm7, %v1573_v52, %v520_v53  ;;  %v1560_v52 = vld [vmem:[%s1856_s29 + $0x20] sm:$0xf] }
  0x33   : > { %v542_v7 = vunpack.c.l.b16 %v517_v59  ;;  %v741_v8 = vshll.u32 %v1976_v60, 16  ;;  %v543_v9 = vunpack.c.l.b16 %v521_v3  ;;  %v738_v10 = vor.u32 %v737_v62, %v734_v61 }
  0x34   : > { %v825_v6 = vpack.c.b16 %v818_v58, %v817_v57  ;;  %v752_v11 = vor.u32 %v751_v2, %v748_v1  ;;  %v755_v14 = vshll.u32 %v1981_v4, 16  ;;  %v1557_v15 = vor.u32 %v1729_v5, %v1556_v13  ;;  %v485_v2 = vld [vmem:[%s1856_s29 + $0x30] sm:$0xe] }
  0x35   : > { %v743_v16 = vrot.slane %v741_v8, 5  ;;  %v549_v18 = vpack.c.b16 %v543_v9, %v542_v7  ;;  %v739_v19 = vrot.slane %v738_v10, 4  ;;  %v760_v25 = vshrl.u32 %v1620_v17, 16  ;;  %v1624_v7 = vld [vmem:[%s1856_s29 + $0x38] sm:$0xf] }
  0x36   : > { %v753_v20 = vrot.slane %v752_v11, 4  ;;  %v757_v21 = vrot.slane %v755_v14, 5  ;;  %v763_v27 = vshll.u32 %v1620_v17, 16  ;;  %v774_v33 = vshrl.u32 %v1622_v22, 16  ;;  %v1626_v8 = vld [vmem:[%s1856_s29 + $0x40] sm:$0xf] }
  0x37   : > { %v744_v31 = vsel %vm1881_vm4, %v739_v19, %v743_v16  ;;  %v777_v34 = vshll.u32 %v1622_v22, 16  ;;  %v1574_v35 = vrot.slane %v483_v23, 9  ;;  %v524_v36 = vrot.slane %v1872_v26, 5  ;;  %v2011_v26 = vld [vmem:[%s1856_s29 + $0x34] sm:$0x1] }
  0x38   : > { %v758_v32 = vsel %vm1881_vm4, %v753_v20, %v757_v21  ;;  %v1575_v38 = vrot.slane %v484_v24, 9  ;;  %v528_v39 = vrot.slane %v1875_v29, 5  ;;  %v762_v40 = vrot.slane %v760_v25, 4  ;;  %v1730_v29 = vld [vmem:[%s1856_s29 + $0x24] sm:$0xf0] }
  0x39   : > { %1608 = vmatmul.msk.bf16.vlgmr.msrb.gmra.mxu3 %vm369_vm3, %v1595_v56  ;;  %v765_v41 = vrot.slane %v763_v27, 5  ;;  %v1599_v42 = vor.u32 %v1733_v30, %v1598_v28  ;;  %v819_v43 = vunpack.c.l.b16 %v744_v31  ;;  %v820_v45 = vunpack.c.l.b16 %v758_v32  ;;  %v1602_v9 = vld [vmem:[%s1856_s29 + $0x28] sm:$0xf]  ;;  %v1734_v14 = vld [vmem:[%s1856_s29 + $0x2c] sm:$0xf0] }
  0x3a   : > { %v776_v48 = vrot.slane %v774_v33, 4  ;;  %v779_v49 = vrot.slane %v777_v34, 5  ;;  %v525_v50 = vsel %vm1915_vm7, %v1574_v35, %v524_v36  ;;  %v529_v51 = vsel %vm1915_vm7, %v1575_v38, %v528_v39  ;;  %v2038_v27 = vld [vmem:[%s1856_s29 + $0x3c] sm:$0x1]  ;;  %v2041_v28 = vld [vmem:[%s1856_s29 + $0x44] sm:$0x1] }
  0x3b   : > { %v766_v53 = vor.u32 %v765_v41, %v762_v40  ;;  %v769_v12 = vshll.u32 %v2004_v47, 16  ;;  %v826_v55 = vpack.c.b16 %v820_v45, %v819_v43  ;;  %v544_v56 = vunpack.c.l.b16 %v525_v50  ;;  %v1564_v34 = vld [vmem:[%s1856_s29 + $0x30] sm:$0xf]  ;;  %v1731_v35 = vld [vmem:[%s1856_s29 + $0x34] sm:$0xf0] }
  0x3c   : > { %v545_v57 = vunpack.c.l.b16 %v529_v51  ;;  %v780_v58 = vor.u32 %v779_v49, %v776_v48  ;;  %v783_v59 = vshll.u32 %v2011_v26, 16  ;;  %v1561_v61 = vor.u32 %v1730_v29, %v1560_v52  ;;  %v1685_v49 = vld [vmem:[%s1856_s29 + $0x18] sm:$0xf] }
  0x3d   : > { %v767_v62 = vrot.slane %v766_v53, 4  ;;  %v771_v1 = vrot.slane %v769_v12, 5  ;;  %v532_v11 = vrot.slane %v1887_v46, 5  ;;  %v536_v17 = vrot.slane %v1893_v54, 5  ;;  %v1633_v12 = vld [vmem:[%s1856_s29 + $0x8] sm:$0xe] }
  0x3e   : > { %1629 = vmatmul.msk.bf16.vlgmr.msrb.gmra.mxu0 %vm369_vm3, %v825_v6  ;;  %v550_v3 = vpack.c.b16 %v545_v57, %v544_v56  ;;  %v781_v13 = vrot.slane %v780_v58, 4  ;;  %v785_v5 = vrot.slane %v783_v59, 5  ;;  %v486_v6 = vld [vmem:[%s1856_s29 + $0x38] sm:$0xe]  ;;  %v791_v20 = vshll.u32 %v1624_v7, 16 }
  0x3f   : > { %1567 = vmatmul.msk.bf16.gmra.mxu1 %vm369_vm3, %v1557_v15  ;;  %v772_v10 = vsel %vm1881_vm4, %v767_v62, %v771_v1  ;;  %v1576_v15 = vrot.slane %v485_v2, 9  ;;  %v1577_v16 = vrot.slane %v486_v6, 9  ;;  %v802_v21 = vshrl.u32 %v1626_v8, 16  ;;  %v1606_v6 = vld [vmem:[%s1856_s29 + $0x38] sm:$0xf] }
  0x40   : > { %v786_v19 = vsel %vm1881_vm4, %v781_v13, %v785_v5  ;;  %v805_v22 = vshll.u32 %v1626_v8, 16  ;;  %v1603_v23 = vor.u32 %v1734_v14, %v1602_v9  ;;  %v821_v46 = vunpack.c.l.b16 %v772_v10  ;;  %v1684_v5 = vld [vmem:[%s1856_s29 + $0x14] sm:$0x1] }
  0x41   : > { %v822_v24 = vunpack.c.l.b16 %v786_v19  ;;  %v533_v25 = vsel %vm1915_vm7, %v1576_v15, %v532_v11  ;;  %v537_v54 = vsel %vm1915_vm7, %v1577_v16, %v536_v17  ;;  %v793_v31 = vrot.slane %v791_v20, 5 }
  0x42   : > { %1580 = vmatmul.msk.bf16.gmra.mxu2 %vm369_vm3, %v549_v18  ;;  %v788_v18 = vshrl.u32 %v1624_v7, 16  ;;  %v804_v32 = vrot.slane %v802_v21, 4  ;;  %v807_v33 = vrot.slane %v805_v22, 5  ;;  %v546_v36 = vunpack.c.l.b16 %v533_v25  ;;  %v1735_v7 = vld [vmem:[%s1856_s29 + $0x3c] sm:$0xf0] }
  0x43   : > { %v827_v38 = vpack.c.b16 %v822_v24, %v821_v46  ;;  %v547_v39 = vunpack.c.l.b16 %v537_v54  ;;  %v797_v40 = vshll.u32 %v2038_v27, 16  ;;  %v811_v41 = vshll.u32 %v2041_v28, 16  ;;  %v1665_v54 = vld [vmem:[%s1856_s29 + $0x10] sm:$0xf] }
  0x44   : > { %v790_v30 = vrot.slane %v788_v18, 4  ;;  %v808_v45 = vor.u32 %v807_v33, %v804_v32  ;;  %v1565_v48 = vor.u32 %v1731_v35, %v1564_v34  ;;  %v1117_v58 = vshrl.u32 %v1685_v49, 16  ;;  %v1736_v32 = vld [vmem:[%s1856_s29 + $0x14] sm:$0xf0]  ;;  %v1687_v35 = vld [vmem:[%s1856_s29 + $0x20] sm:$0xf] }
  0x45   : > { %v551_v52 = vpack.c.b16 %v547_v39, %v546_v36  ;;  %v799_v29 = vrot.slane %v797_v40, 5  ;;  %v813_v53 = vrot.slane %v811_v41, 5  ;;  %v1120_v59 = vshll.u32 %v1685_v49, 16 }
  0x46   : > { %v794_v43 = vor.u32 %v793_v31, %v790_v30  ;;  %v809_v57 = vrot.slane %v808_v45, 4  ;;  %v911_v62 = vrot.slane %v1937_v0, 5  ;;  %v1641_v1 = vrot.slane %v1633_v12, 9  ;;  %v1686_v0 = vld [vmem:[%s1856_s29 + $0x1c] sm:$0x1] }
  0x47   : > { %v1122_v10 = vrot.slane %v1120_v59, 5  ;;  %v1112_v16 = vshll.u32 %v1684_v5, 16  ;;  %v1607_v17 = vor.u32 %v1735_v7, %v1606_v6  ;;  %v1126_v21 = vshll.u32 %v1686_v0, 16  ;;  %v1704_v30 = vld [vmem:[%s1856_s29 + $0x10] sm:$0xe] }
  0x48   : > { %v795_v56 = vrot.slane %v794_v43, 4  ;;  %v814_v9 = vsel %vm1881_vm4, %v809_v57, %v813_v53  ;;  %v1705_v31 = vld [vmem:[%s1856_s29 + $0x18] sm:$0xe]  ;;  %v1712_v40 = vrot.slane %v1704_v30, 9  ;;  %v1306_v41 = vrot.slane %v1684_v5, 5 }
  0x49   : > { %1609 = vmatmul.msk.bf16.gmra.mxu3 %vm369_vm3, %v1599_v42  ;;  %v1683_v42 = vld [vmem:[%s1856_s29 + $0x10] sm:$0xf]  ;;  %v824_v19 = vunpack.c.l.b16 %v814_v9  ;;  %v1114_v24 = vrot.slane %v1112_v16, 5  ;;  %v1128_v34 = vrot.slane %v1126_v21, 5  ;;  %v1666_v43 = vor.u32 %v1736_v32, %v1665_v54  ;;  %v1635_v45 = vld [vmem:[%s1856_s29 + $0x18] sm:$0xe] }
  0x4a   : > { %v1103_v50 = vshrl.u32 %v1683_v42, 16  ;;  %v1106_v51 = vshll.u32 %v1683_v42, 16  ;;  %v800_v8 = vsel %vm1881_vm4, %v795_v56, %v799_v29  ;;  %v1713_v42 = vrot.slane %v1705_v31, 9  ;;  %v1690_v6 = vld [vmem:[%s1856_s29 + $0x2c] sm:$0x1] }
  0x4b   : > { %v823_v18 = vunpack.c.l.b16 %v800_v8  ;;  %v1131_v49 = vshrl.u32 %v1687_v35, 16  ;;  %v915_v56 = vrot.slane %v1976_v60, 5  ;;  %v1669_v16 = vld [vmem:[%s1856_s29 + $0x20] sm:$0xf]  ;;  %v1691_v21 = vld [vmem:[%s1856_s29 + $0x30] sm:$0xf] }
  0x4c   : > { %v1108_v13 = vrot.slane %v1106_v51, 5  ;;  %v1693_v54 = vld [vmem:[%s1856_s29 + $0x38] sm:$0xf]  ;;  %v1159_v31 = vshrl.u32 %v1691_v21, 16  ;;  %v1162_v32 = vshll.u32 %v1691_v21, 16 }
  0x4d   : > { %v828_v25 = vpack.c.b16 %v824_v19, %v823_v18 }
  0x4e   : > { %1630 = vmatmul.msk.bf16.gmra.mxu0 %vm369_vm3, %v826_v55  ;;  %v1634_v55 = vld [vmem:[%s1856_s29 + $0x10] sm:$0xe] }
  0x4f   : > { %1568 = vmatmul.msk.bf16.gmra.mxu1 %vm369_vm3, %v1561_v61  ;;  %v907_v61 = vrot.slane %v1934_v63, 5  ;;  %v1642_v2 = vrot.slane %v1634_v55, 9  ;;  %v1119_v63 = vrot.slane %v1117_v58, 4  ;;  %v1643_v55 = vrot.slane %v1635_v45, 9 }
  0x50   : > { %v919_v58 = vrot.slane %v1981_v4, 5  ;;  %v923_v45 = vrot.slane %v2004_v47, 5  ;;  %v1694_v47 = vld [vmem:[%s1856_s29 + $0x3c] sm:$0x1] }
  0x51   : > { %v908_v11 = vsel %vm1915_vm7, %v1641_v1, %v907_v61  ;;  %v912_v14 = vsel %vm1915_vm7, %v1642_v2, %v911_v62  ;;  %v1123_v20 = vor.u32 %v1122_v10, %v1119_v63  ;;  %v1307_v61 = vsel %vm1915_vm7, %v1712_v40, %v1306_v41 }
  0x52   : > { %1581 = vmatmul.msk.bf16.gmra.mxu2 %vm369_vm3, %v550_v3  ;;  %v1105_v3 = vrot.slane %v1103_v50, 4  ;;  %v939_v22 = vunpack.c.l.b16 %v908_v11  ;;  %v1134_v50 = vshll.u32 %v1687_v35, 16  ;;  %v1133_v62 = vrot.slane %v1131_v49, 4 }
  0x53   : > { %v1124_v33 = vrot.slane %v1123_v20, 4  ;;  %v1338_v60 = vunpack.c.l.b16 %v1307_v61  ;;  %v916_v4 = vsel %vm1915_vm7, %v1643_v55, %v915_v56  ;;  %v1154_v11 = vshll.u32 %v1690_v6, 16  ;;  %v1706_v20 = vld [vmem:[%s1856_s29 + $0x20] sm:$0xe] }
  0x54   : > { %v1109_v15 = vor.u32 %v1108_v13, %v1105_v3  ;;  %v1136_v1 = vrot.slane %v1134_v50, 5  ;;  %v1688_v3 = vld [vmem:[%s1856_s29 + $0x24] sm:$0x1]  ;;  %v1714_v30 = vrot.slane %v1706_v20, 9  ;;  %v1318_v41 = vrot.slane %v1690_v6, 5 }
  0x55   : > { %v1129_v51 = vsel %vm1881_vm4, %v1124_v33, %v1128_v34  ;;  %v1140_v10 = vshll.u32 %v1688_v3, 16  ;;  %v1314_v35 = vrot.slane %v1688_v3, 5 }
  0x56   : > { %v1110_v46 = vrot.slane %v1109_v15, 4  ;;  %v1217_v59 = vunpack.c.l.b16 %v1129_v51  ;;  %v1137_v63 = vor.u32 %v1136_v1, %v1133_v62  ;;  %v1161_v51 = vrot.slane %v1159_v31, 4 }
  0x57   : > { %v1142_v19 = vrot.slane %v1140_v10, 5  ;;  %v1315_v55 = vsel %vm1915_vm7, %v1714_v30, %v1314_v35  ;;  %v1709_v10 = vld [vmem:[%s1856_s29 + $0x38] sm:$0xe]  ;;  %v1326_v30 = vrot.slane %v1694_v47, 5  ;;  %v931_v35 = vrot.slane %v2038_v27, 5 }
  0x58   : > { %v1115_v39 = vsel %vm1881_vm4, %v1110_v46, %v1114_v24  ;;  %v1138_v18 = vrot.slane %v1137_v63, 4  ;;  %v1156_v46 = vrot.slane %v1154_v11, 5  ;;  %v1707_v24 = vld [vmem:[%s1856_s29 + $0x28] sm:$0xe]  ;;  %v1708_v63 = vld [vmem:[%s1856_s29 + $0x30] sm:$0xe] }
  0x59   : > { %1610 = vmatmul.msk.bf16.gmra.mxu3 %vm369_vm3, %v1603_v23  ;;  %v940_v23 = vunpack.c.l.b16 %v912_v14  ;;  %v1216_v12 = vunpack.c.l.b16 %v1115_v39  ;;  %v941_v14 = vunpack.c.l.b16 %v916_v4  ;;  %v1638_v39 = vld [vmem:[%s1856_s29 + $0x30] sm:$0xe]  ;;  %v1717_v21 = vrot.slane %v1709_v10, 9 }
  0x5a   : > { %v1143_v34 = vsel %vm1881_vm4, %v1138_v18, %v1142_v19  ;;  %v1646_v50 = vrot.slane %v1638_v39, 9  ;;  %v1716_v19 = vrot.slane %v1708_v63, 9 }
  0x5b   : > { %v947_v36 = vpack.c.b16 %v940_v23, %v939_v22  ;;  %v1224_v8 = vpack.c.b16 %v1217_v59, %v1216_v12  ;;  %v1737_v22 = vld [vmem:[%s1856_s29 + $0x24] sm:$0xf0]  ;;  %v1692_v12 = vld [vmem:[%s1856_s29 + $0x34] sm:$0x1] }
  0x5c   : > { %v1670_v33 = vor.u32 %v1737_v22, %v1669_v16  ;;  %v1168_v62 = vshll.u32 %v1692_v12, 16  ;;  %v1322_v20 = vrot.slane %v1692_v12, 5 }
  0x5e   : > { %1631 = vmatmul.msk.bf16.gmra.mxu0 %vm369_vm3, %v827_v38  ;;  %v1689_v38 = vld [vmem:[%s1856_s29 + $0x28] sm:$0xf] }
  0x5f   : > { %1569 = vmatmul.msk.bf16.gmra.mxu1 %vm369_vm3, %v1565_v48  ;;  %v1636_v48 = vld [vmem:[%s1856_s29 + $0x20] sm:$0xe]  ;;  %v1145_v29 = vshrl.u32 %v1689_v38, 16  ;;  %v1148_v53 = vshll.u32 %v1689_v38, 16  ;;  %v1637_v38 = vld [vmem:[%s1856_s29 + $0x28] sm:$0xe] }
  0x60   : > { %v1644_v57 = vrot.slane %v1636_v48, 9  ;;  %v927_v48 = vrot.slane %v2011_v26, 5  ;;  %v1645_v49 = vrot.slane %v1637_v38, 9  ;;  %v935_v38 = vrot.slane %v2041_v28, 5 }
  0x61   : > { %v1147_v13 = vrot.slane %v1145_v29, 4  ;;  %v1150_v5 = vrot.slane %v1148_v53, 5  ;;  %v1218_v29 = vunpack.c.l.b16 %v1143_v34 }
  0x62   : > { %1582 = vmatmul.msk.bf16.gmra.mxu2 %vm369_vm3, %v551_v52  ;;  %v1310_v52 = vrot.slane %v1686_v0, 5  ;;  %v920_v7 = vsel %vm1915_vm7, %v1644_v57, %v919_v58  ;;  %v924_v26 = vsel %vm1915_vm7, %v1645_v49, %v923_v45  ;;  %v928_v59 = vsel %vm1915_vm7, %v1646_v50, %v927_v48  ;;  %v1696_v45 = vld [vmem:[%s1856_s29 + $0x44] sm:$0x1]  ;;  %v1698_v50 = vld [vmem:[%s1856_s29 + $0x4c] sm:$0x1] }
  0x63   : > { %v1151_v0 = vor.u32 %v1150_v5, %v1147_v13  ;;  %v942_v15 = vunpack.c.l.b16 %v920_v7  ;;  %v1182_v5 = vshll.u32 %v1694_v47, 16  ;;  %v943_v6 = vunpack.c.l.b16 %v924_v26 }
  0x64   : > { %v1311_v2 = vsel %vm1915_vm7, %v1713_v42, %v1310_v52  ;;  %v1173_v42 = vshrl.u32 %v1693_v54, 16  ;;  %v1164_v52 = vrot.slane %v1162_v32, 5  ;;  %v1170_v7 = vrot.slane %v1168_v62, 5 }
  0x65   : > { %v1339_v9 = vunpack.c.l.b16 %v1311_v2  ;;  %v1152_v23 = vrot.slane %v1151_v0, 4  ;;  %v1340_v2 = vunpack.c.l.b16 %v1315_v55  ;;  %v1738_v0 = vld [vmem:[%s1856_s29 + $0x34] sm:$0xf0]  ;;  %v1196_v12 = vshll.u32 %v1696_v45, 16 }
  0x66   : > { %v1175_v57 = vrot.slane %v1173_v42, 4  ;;  %v1165_v61 = vor.u32 %v1164_v52, %v1161_v51  ;;  %v1334_v10 = vrot.slane %v1698_v50, 5 }
  0x67   : > { %v1157_v40 = vsel %vm1881_vm4, %v1152_v23, %v1156_v46  ;;  %v1639_v23 = vld [vmem:[%s1856_s29 + $0x38] sm:$0xe]  ;;  %v1640_v46 = vld [vmem:[%s1856_s29 + $0x40] sm:$0xe] }
  0x68   : > { %v1219_v53 = vunpack.c.l.b16 %v1157_v40  ;;  %v1166_v4 = vrot.slane %v1165_v61, 4  ;;  %v1647_v34 = vrot.slane %v1639_v23, 9  ;;  %v1323_v40 = vsel %vm1915_vm7, %v1716_v19, %v1322_v20 }
  0x69   : > { %1611 = vmatmul.msk.bf16.gmra.mxu3 %vm369_vm3, %v1607_v17  ;;  %v1346_v17 = vpack.c.b16 %v1339_v9, %v1338_v60  ;;  %v944_v60 = vunpack.c.l.b16 %v928_v59  ;;  %v1673_v9 = vld [vmem:[%s1856_s29 + $0x30] sm:$0xf]  ;;  %v1342_v51 = vunpack.c.l.b16 %v1323_v40  ;;  %v1198_v59 = vrot.slane %v1196_v12, 5 }
  0x6a   : > { %v1225_v1 = vpack.c.b16 %v1219_v53, %v1218_v29  ;;  %v1171_v18 = vsel %vm1881_vm4, %v1166_v4, %v1170_v7  ;;  %v1674_v22 = vor.u32 %v1738_v0, %v1673_v9  ;;  %v932_v27 = vsel %vm1915_vm7, %v1647_v34, %v931_v35 }
  0x6b   : > { %v949_v16 = vpack.c.b16 %v944_v60, %v943_v6  ;;  %v1330_v7 = vrot.slane %v1696_v45, 5 }
  0x6e   : > { %1632 = vmatmul.msk.bf16.gmra.mxu0 %vm369_vm3, %v828_v25  ;;  %v948_v25 = vpack.c.b16 %v942_v15, %v941_v14  ;;  %v1184_v14 = vrot.slane %v1182_v5, 5  ;;  %v1695_v15 = vld [vmem:[%s1856_s29 + $0x40] sm:$0xf]  ;;  %v1711_v5 = vld [vmem:[%s1856_s29 + $0x48] sm:$0xe] }
  0x6f   : > { %1650 = vmatmul.msk.bf16.vlgmr.msra.gmra.mxu1 %vm369_vm3, %v947_v36  ;;  %v1715_v36 = vrot.slane %v1707_v24, 9  ;;  %v1187_v24 = vshrl.u32 %v1695_v15, 16  ;;  %v1719_v63 = vrot.slane %v1711_v5, 9 }
  0x71   : > { %v1319_v56 = vsel %vm1915_vm7, %v1715_v36, %v1318_v41  ;;  %v1648_v36 = vrot.slane %v1640_v46, 9  ;;  %v1189_v41 = vrot.slane %v1187_v24, 4 }
  0x72   : > { %1679 = vmatmul.msk.bf16.vlgmr.msra.gmra.mxu2 %vm369_vm3, %v1666_v43  ;;  %v1176_v43 = vshll.u32 %v1693_v54, 16  ;;  %v1341_v3 = vunpack.c.l.b16 %v1319_v56  ;;  %v1210_v56 = vshll.u32 %v1698_v50, 16 }
  0x73   : > { %v936_v28 = vsel %vm1915_vm7, %v1648_v36, %v935_v38 }
  0x74   : > { %v1178_v58 = vrot.slane %v1176_v43, 5  ;;  %v1327_v43 = vsel %vm1915_vm7, %v1717_v21, %v1326_v30  ;;  %v1212_v62 = vrot.slane %v1210_v56, 5 }
  0x75   : > { %v1343_v29 = vunpack.c.l.b16 %v1327_v43 }
  0x76   : > { %v1179_v13 = vor.u32 %v1178_v58, %v1175_v57  ;;  %v945_v57 = vunpack.c.l.b16 %v932_v27  ;;  %v946_v58 = vunpack.c.l.b16 %v936_v28 }
  0x77   : > { %v1348_v47 = vpack.c.b16 %v1343_v29, %v1342_v51 }
  0x78   : > { %v1180_v11 = vrot.slane %v1179_v13, 4  ;;  %v1739_v13 = vld [vmem:[%s1856_s29 + $0x44] sm:$0xf0] }
  0x79   : > { %1700 = vmatmul.msk.bf16.vlgmr.msra.gmra.mxu3 %vm369_vm3, %v1224_v8  ;;  %v1347_v8 = vpack.c.b16 %v1341_v3, %v1340_v2  ;;  %v950_v2 = vpack.c.b16 %v946_v58, %v945_v57  ;;  %v1677_v3 = vld [vmem:[%s1856_s29 + $0x40] sm:$0xf] }
  0x7a   : > { %v1185_v54 = vsel %vm1881_vm4, %v1180_v11, %v1184_v14 }
  0x7b   : > { %v1221_v39 = vunpack.c.l.b16 %v1185_v54 }
  0x7e   : > { %1721 = vmatmul.msk.bf16.vlgmr.msra.gmra.mxu0 %vm369_vm3, %v1346_v17  ;;  %v1697_v17 = vld [vmem:[%s1856_s29 + $0x48] sm:$0xf] }
  0x7f   : > { %1651 = vmatmul.msk.bf16.gmra.mxu1 %vm369_vm3, %v948_v25  ;;  %v1190_v25 = vshll.u32 %v1695_v15, 16  ;;  %v1201_v31 = vshrl.u32 %v1697_v17, 16  ;;  %v1204_v32 = vshll.u32 %v1697_v17, 16  ;;  %v1335_v15 = vsel %vm1915_vm7, %v1719_v63, %v1334_v10 }
  0x80   : > { %v1345_v37 = vunpack.c.l.b16 %v1335_v15 }
  0x81   : > { %v1192_v42 = vrot.slane %v1190_v25, 5  ;;  %v1203_v48 = vrot.slane %v1201_v31, 4  ;;  %v1206_v49 = vrot.slane %v1204_v32, 5 }
  0x82   : > { %1680 = vmatmul.msk.bf16.gmra.mxu2 %vm369_vm3, %v1670_v33  ;;  %v1220_v33 = vunpack.c.l.b16 %v1171_v18 }
  0x83   : > { %v1193_v53 = vor.u32 %v1192_v42, %v1189_v41  ;;  %v1207_v55 = vor.u32 %v1206_v49, %v1203_v48 }
  0x84   : > { %v1226_v52 = vpack.c.b16 %v1221_v39, %v1220_v33 }
  0x85   : > { %v1194_v26 = vrot.slane %v1193_v53, 4  ;;  %v1208_v61 = vrot.slane %v1207_v55, 4 }
  0x87   : > { %v1199_v60 = vsel %vm1881_vm4, %v1194_v26, %v1198_v59  ;;  %v1213_v9 = vsel %vm1881_vm4, %v1208_v61, %v1212_v62 }
  0x88   : > { %v1222_v0 = vunpack.c.l.b16 %v1199_v60  ;;  %v1223_v11 = vunpack.c.l.b16 %v1213_v9 }
  0x89   : > { %1701 = vmatmul.msk.bf16.gmra.mxu3 %vm369_vm3, %v1225_v1  ;;  %v1710_v1 = vld [vmem:[%s1856_s29 + $0x40] sm:$0xe] }
  0x8a   : > { %v1718_v4 = vrot.slane %v1710_v1, 9  ;;  %v1227_v17 = vpack.c.b16 %v1223_v11, %v1222_v0 }
  0x8c   : > { %v1331_v14 = vsel %vm1915_vm7, %v1718_v4, %v1330_v7 }
  0x8d   : > { %v1344_v18 = vunpack.c.l.b16 %v1331_v14  ;;  %v2219_v14 = vld [vmem:[%s2275_s2] ss:$0 sm:$0xff] }
  0x8e   : > { %1722 = vmatmul.msk.bf16.gmra.mxu0 %vm369_vm3, %v1347_v8  ;;  %v1678_v8 = vor.u32 %v1739_v13, %v1677_v3 }
  0x8f   : > { %1652 = vmatmul.msk.bf16.gmra.mxu1 %vm369_vm3, %v949_v16  ;;  %v1349_v20 = vpack.c.b16 %v1345_v37, %v1344_v18 }
  0x92   : > { %1681 = vmatmul.msk.bf16.gmra.mxu2 %vm369_vm3, %v1674_v22 }
  0x99   : > { %1702 = vmatmul.msk.bf16.gmra.mxu3 %vm369_vm3, %v1226_v52 }
  0x9c   : > { %v2158_v6 = vpop.f32.mrf.mxu1 }
  0x9e   : > { %1723 = vmatmul.msk.bf16.gmra.mxu0 %vm369_vm3, %v1348_v47 }
  0x9f   : > { %1653 = vmatmul.msk.bf16.gmra.mxu1 %vm369_vm3, %v950_v2 }
  0xa2   : > { %1682 = vmatmul.msk.bf16.gmra.mxu2 %vm369_vm3, %v1678_v8 }
  0xa4   : > { %v2171_v16 = vpop.f32.mrf.mxu1 }
  0xa5   : > { %v2173_v19 = vpop.f32.mrf.mxu2 }
  0xa9   : > { %1703 = vmatmul.msk.bf16.gmra.mxu3 %vm369_vm3, %v1227_v17 }
  0xab   : > { %v395_v21 = vpop.f32.mrf.mxu0 }
  0xac   : > { %v2176_v22 = vpop.f32.mrf.mxu3  ;;  %v459_v23 = vpop.f32.mrf.mxu1 }
  0xad   : > { %v2179_v46 = vpop.f32.mrf.mxu2  ;;  %v460_v56 = vadd.f32 %v459_v23, %v395_v21 }
  0xae   : > { %1724 = vmatmul.msk.bf16.gmra.mxu0 %vm369_vm3, %v1349_v20 }
  0xb3   : > { %v397_v44 = vpop.f32.mrf.mxu0 }
  0xb4   : > { %v2181_v24 = vpop.f32.mrf.mxu3  ;;  %v461_v25 = vpop.f32.mrf.mxu1 }
  0xb5   : > { %v576_v54 = vpop.f32.mrf.mxu2  ;;  %v462_v62 = vadd.f32 %v461_v25, %v397_v44 }
  0xb6   : > { %v596_v47 = vadd.f32 %v576_v54, %v460_v56 }
  0xbb   : > { %v853_v30 = vpop.f32.mrf.mxu0 }
  0xbc   : > { %v659_v31 = vpop.f32.mrf.mxu3  ;;  %v464_v32 = vpop.f32.mrf.mxu1 }
  0xbd   : > { %v578_v33 = vpop.f32.mrf.mxu2  ;;  %v679_v59 = vadd.f32 %v659_v31, %v596_v47  ;;  %v465_v9 = vadd.f32 %v464_v32, %v2158_v6 }
  0xbe   : > { %v597_v3 = vadd.f32 %v578_v33, %v462_v62 }
  0xbf   : > { %v873_v13 = vadd.f32 %v853_v30, %v679_v59 }
  0xc3   : > { %v855_v34 = vpop.f32.mrf.mxu0 }
  0xc4   : > { %v661_v35 = vpop.f32.mrf.mxu3  ;;  %v466_v36 = vpop.f32.mrf.mxu1 }
  0xc5   : > { %v581_v38 = vpop.f32.mrf.mxu2  ;;  %v680_v4 = vadd.f32 %v661_v35, %v597_v3  ;;  %v467_v44 = vadd.f32 %v466_v36, %v2171_v16 }
  0xc6   : > { %v598_v0 = vadd.f32 %v581_v38, %v465_v9 }
  0xc7   : > { %v874_v15 = vadd.f32 %v855_v34, %v680_v4 }
  0xcb   : > { %v858_v39 = vpop.f32.mrf.mxu0 }
  0xcc   : > { %v664_v40 = vpop.f32.mrf.mxu3  ;;  %v2183_v41 = vpop.f32.mrf.mxu1 }
  0xcd   : > { %v583_v42 = vpop.f32.mrf.mxu2  ;;  %v681_v20 = vadd.f32 %v664_v40, %v598_v0  ;;  %v470_v59 = vadd.f32 %v2183_v41, %v2173_v19 }
  0xce   : > { %v599_v31 = vadd.f32 %v583_v42, %v467_v44 }
  0xcf   : > { %v875_v33 = vadd.f32 %v858_v39, %v681_v20 }
  0xd3   : > { %v2185_v43 = vpop.f32.mrf.mxu0 }
  0xd4   : > { %v666_v45 = vpop.f32.mrf.mxu3  ;;  %v2187_v48 = vpop.f32.mrf.mxu1 }
  0xd5   : > { %v586_v49 = vpop.f32.mrf.mxu2  ;;  %v682_v40 = vadd.f32 %v666_v45, %v599_v31  ;;  %v472_v19 = vadd.f32 %v2187_v48, %v2179_v46 }
  0xd6   : > { %v600_v62 = vadd.f32 %v586_v49, %v470_v59 }
  0xdb   : > { %v2189_v50 = vpop.f32.mrf.mxu0 }
  0xdc   : > { %v2191_v51 = vpop.f32.mrf.mxu3  ;;  %v2193_v27 = vpop.f32.mrf.mxu1 }
  0xdd   : > { %v2195_v28 = vpop.f32.mrf.mxu2  ;;  %v683_v45 = vadd.f32 %v2191_v51, %v600_v62  ;;  %v475_v46 = vadd.f32 %v2193_v27, %v2176_v22 }
  0xdf   : > { %v877_v9 = vadd.f32 %v2189_v50, %v683_v45 }
  0xe3   : > { %v2197_v52 = vpop.f32.mrf.mxu0 }
  0xe4   : > { %v2199_v29 = vpop.f32.mrf.mxu3  ;;  %v2201_v53 = vpop.f32.mrf.mxu1 }
  0xe5   : > { %v2203_v12 = vpop.f32.mrf.mxu2  ;;  %v477_v22 = vadd.f32 %v2201_v53, %v2181_v24 }
  0xeb   : > { %v2205_v55 = vpop.f32.mrf.mxu0 }
  0xec   : > { %v2207_v57 = vpop.f32.mrf.mxu3  ;;  %v975_v58 = vpop.f32.mrf.mxu1 }
  0xed   : > { %v2209_v26 = vpop.f32.mrf.mxu2  ;;  %v995_v60 = vadd.f32 %v975_v58, %v873_v13 }
  0xee   : > { %v603_v31 = vadd.f32 %v2209_v26, %v477_v22 }
  0xf3   : > { %v2211_v61 = vpop.f32.mrf.mxu0 }
  0xf4   : > { %v2213_v1 = vpop.f32.mrf.mxu3  ;;  %v977_v2 = vpop.f32.mrf.mxu1 }
  0xf5   : > { %v1058_v5 = vpop.f32.mrf.mxu2  ;;  %v996_v37 = vadd.f32 %v977_v2, %v874_v15  ;;  %v876_v2 = vadd.f32 %v2185_v43, %v682_v40 }
  0xf6   : > { %v1078_v7 = vadd.f32 %v1058_v5, %v995_v60 }
  0xfb   : > { %v1374_v8 = vpop.f32.mrf.mxu0 }
  0xfc   : > { %v1252_v63 = vpop.f32.mrf.mxu3  ;;  %v980_v10 = vpop.f32.mrf.mxu1 }
  0xfd   : > { %v1272_v11 = vadd.f32 %v1252_v63, %v1078_v7  ;;  %v1060_v17 = vpop.f32.mrf.mxu2  ;;  %v997_v38 = vadd.f32 %v980_v10, %v875_v33 }
  0xfe   : > { %v1079_v23 = vadd.f32 %v1060_v17, %v996_v37  ;;  %v602_v37 = vadd.f32 %v2203_v12, %v475_v46 }
  0xff   : > { %v1394_v18 = vadd.f32 %v1374_v8, %v1272_v11  ;;  %v601_v8 = vadd.f32 %v2195_v28, %v472_v19 }
 0x101   : > { %v1406_v21 = vadd.f32 %v2219_v14, %v1394_v18  ;;  %v684_v11 = vadd.f32 %v2199_v29, %v601_v8  ;;  %v685_v29 = vadd.f32 %v2207_v57, %v602_v37 }
 0x103   : > { %v1376_v6 = vpop.f32.mrf.mxu0  ;;  %v1414_v25 = vmax.f32 %v1406_v21, 0.0  ;;  %v878_v20 = vadd.f32 %v2197_v52, %v684_v11 }
 0x104   : > { %v1254_v54 = vpop.f32.mrf.mxu3  ;;  %v982_v30 = vpop.f32.mrf.mxu1 }
 0x105   : > { %1422 = vst [vmem:[%s2226_s20] sm:$0xff] %v1414_v25  ;;  %v1273_v32 = vadd.f32 %v1254_v54, %v1079_v23  ;;  %v1063_v34 = vpop.f32.mrf.mxu2  ;;  %v998_v5 = vadd.f32 %v982_v30, %v876_v2 }
 0x106   : > { %v1080_v58 = vadd.f32 %v1063_v34, %v997_v38 }
 0x107   : > { %v1395_v35 = vadd.f32 %v1376_v6, %v1273_v32  ;;  %v879_v32 = vadd.f32 %v2205_v55, %v685_v29 }
 0x109   : > { %v1407_v56 = vadd.f32 %v2219_v14, %v1395_v35  ;;  %v686_v35 = vadd.f32 %v2213_v1, %v603_v31 }
 0x10b   : > { %v1379_v47 = vpop.f32.mrf.mxu0  ;;  %v1415_v16 = vmax.f32 %v1407_v56, 0.0 }
 0x10c   : > { %v1257_v36 = vpop.f32.mrf.mxu3  ;;  %v985_v3 = vpop.f32.mrf.mxu1 }
 0x10d   : > { %1423 = vst [vmem:[%s2226_s20 + $0x8] sm:$0xff] %v1415_v16  ;;  %v1274_v42 = vadd.f32 %v1257_v36, %v1080_v58  ;;  %v1065_v39 = vpop.f32.mrf.mxu2  ;;  %v999_v0 = vadd.f32 %v985_v3, %v877_v9 }
 0x10e   : > { %v1081_v4 = vadd.f32 %v1065_v39, %v998_v5 }
 0x10f   : > { %v1396_v13 = vadd.f32 %v1379_v47, %v1274_v42  ;;  %v880_v47 = vadd.f32 %v2211_v61, %v686_v35 }
 0x111   : > { %v1408_v60 = vadd.f32 %v2219_v14, %v1396_v13 }
 0x113   : > { %v1381_v7 = vpop.f32.mrf.mxu0  ;;  %v1416_v41 = vmax.f32 %v1408_v60, 0.0 }
 0x114   : > { %v1259_v49 = vpop.f32.mrf.mxu3  ;;  %v987_v51 = vpop.f32.mrf.mxu1 }
 0x115   : > { %1424 = vst [vmem:[%s2226_s20 + $0x10] sm:$0xff] %v1416_v41  ;;  %v1275_v43 = vadd.f32 %v1259_v49, %v1081_v4  ;;  %v1068_v63 = vpop.f32.mrf.mxu2  ;;  %v1000_v6 = vadd.f32 %v987_v51, %v878_v20 }
 0x116   : > { %v1082_v17 = vadd.f32 %v1068_v63, %v999_v0 }
 0x117   : > { %v1397_v10 = vadd.f32 %v1381_v7, %v1275_v43 }
 0x119   : > { %v1409_v15 = vadd.f32 %v2219_v14, %v1397_v10 }
 0x11b   : > { %v1384_v18 = vpop.f32.mrf.mxu0  ;;  %v1417_v48 = vmax.f32 %v1409_v15, 0.0 }
 0x11c   : > { %v1262_v28 = vpop.f32.mrf.mxu3  ;;  %v990_v54 = vpop.f32.mrf.mxu1 }
 0x11d   : > { %1425 = vst [vmem:[%s2226_s20 + $0x18] sm:$0xff] %v1417_v48  ;;  %v1276_v50 = vadd.f32 %v1262_v28, %v1082_v17  ;;  %v1070_v21 = vpop.f32.mrf.mxu2  ;;  %v1001_v57 = vadd.f32 %v990_v54, %v879_v32 }
 0x11e   : > { %v1083_v25 = vadd.f32 %v1070_v21, %v1000_v6 }
 0x11f   : > { %v1398_v23 = vadd.f32 %v1384_v18, %v1276_v50 }
 0x121   : > { %v1410_v44 = vadd.f32 %v2219_v14, %v1398_v23 }
 0x123   : > { %v1386_v30 = vpop.f32.mrf.mxu0  ;;  %v1418_v27 = vmax.f32 %v1410_v44, 0.0 }
 0x124   : > { %v1264_v12 = vpop.f32.mrf.mxu3  ;;  %v992_v24 = vpop.f32.mrf.mxu1 }
 0x125   : > { %1426 = vst [vmem:[%s2226_s20 + $0x20] sm:$0xff] %v1418_v27  ;;  %v1277_v52 = vadd.f32 %v1264_v12, %v1083_v25  ;;  %v1073_v33 = vpop.f32.mrf.mxu2  ;;  %v1002_v16 = vadd.f32 %v992_v24, %v880_v47 }
 0x126   : > { %v1084_v40 = vadd.f32 %v1073_v33, %v1001_v57 }
 0x127   : > { %v1399_v34 = vadd.f32 %v1386_v30, %v1277_v52 }
 0x129   : > { %v1411_v38 = vadd.f32 %v2219_v14, %v1399_v34 }
 0x12b   : > { %v1419_v56 = vmax.f32 %v1411_v38, 0.0  ;;  %v1389_v53 = vpop.f32.mrf.mxu0 }
 0x12c   : > { %v1267_v58 = vpop.f32.mrf.mxu3 }
 0x12d   : > { %1427 = vst [vmem:[%s2226_s20 + $0x28] sm:$0xff] %v1419_v56  ;;  %v1278_v26 = vadd.f32 %v1267_v58, %v1084_v40  ;;  %v1075_v59 = vpop.f32.mrf.mxu2 }
 0x12e   : > { %v1085_v62 = vadd.f32 %v1075_v59, %v1002_v16 }
 0x12f   : > { %v1400_v55 = vadd.f32 %v1389_v53, %v1278_v26 }
 0x131   : > { %v1412_v36 = vadd.f32 %v2219_v14, %v1400_v55 }
 0x133   : > { %v1420_v1 = vmax.f32 %v1412_v36, 0.0  ;;  %v1391_v39 = vpop.f32.mrf.mxu0 }
 0x134   : > { %v1269_v42 = vpop.f32.mrf.mxu3 }
 0x135   : > { %1428 = vst [vmem:[%s2226_s20 + $0x30] sm:$0xff] %v1420_v1  ;;  %v1279_v2 = vadd.f32 %v1269_v42, %v1085_v62 }
 0x137   : > { %v1401_v3 = vadd.f32 %v1391_v39, %v1279_v2 }
 0x139   : > { %v1413_v13 = vadd.f32 %v2219_v14, %v1401_v3 }
 0x13b   : > { %v1421_v5 = vmax.f32 %v1413_v13, 0.0 }
 0x13d   : > { %1429 = vst [vmem:[%s2226_s20 + $0x38] sm:$0xff] %v1421_v5 }
 0x13e PF: > { %s13_s14 = sadd.s32 1, %s1791_s14   ;;  %s2281_s12 = smov %s1787_s13 }
 0x13f   : > { %p10_p5 = scmp.ge.s32.totalorder %s13_s14, 4   ;;  %s2282_s13 = smov %s2284_s15 }
 0x141   :  { %12 = sbr.rel (!%p10_p5) target bundleno = 2 (0x2), region = 78 }

</bundles_post_ra>
